<compile_context>
chip_gen: v7x
topology: tpu7x:2x2x1
jax: 0.10.0
libtpu: 0.0.40
codegen_flags: <defaults>
</compile_context>

<pallas_src>
import functools

import jax
import jax.numpy as jnp
from jax.experimental import pallas as pl
from jax.experimental.pallas import tpu as pltpu


def _conv_gru_kernel(x_ref, h_ref, m1_ref, m2_ref, b1_ref, b2_ref, out_ref,
                     xh_taps, sr_taps, *, H, BWC, K):
    """One ConvGRU step on lane-packed (H, B*W*C) slabs."""
    p = (K - 1) // 2

    def shifted_store(dst, lane_lo, read_rows, sh):
        # dst[y, lane_lo:lane_lo+BWC] = src[y + sh]  (zero where y+sh is out of
        # range) -- implements the y 'same' padding with static sublane copies.
        hi = lane_lo + BWC
        rows = H - abs(sh)
        if sh < 0:
            dst[pl.ds(0, -sh), lane_lo:hi] = jnp.zeros((-sh, BWC), jnp.float32)
            dst[pl.ds(-sh, rows), lane_lo:hi] = read_rows(0, rows)
        elif sh > 0:
            dst[pl.ds(rows, sh), lane_lo:hi] = jnp.zeros((sh, BWC), jnp.float32)
            dst[pl.ds(0, rows), lane_lo:hi] = read_rows(sh, rows)
        else:
            dst[:, lane_lo:hi] = read_rows(0, H)

    # ---- Fold the K kernel-row taps of x and h side-by-side along lanes.
    x_read = lambda s, n: x_ref[pl.ds(s, n), :]
    h_read = lambda s, n: h_ref[pl.ds(s, n), :]
    for dy in range(K):
        sh = dy - p
        shifted_store(xh_taps, dy * 2 * BWC, x_read, sh)          # x path
        shifted_store(xh_taps, dy * 2 * BWC + BWC, h_read, sh)    # h path

    # ---- GEMM 1: all taps of conv_{ir,iz,in}(x) + conv_{hr,hz}(h), one deep
    # contraction.  dx offsets and x zero-padding live in the banded weights.
    acc1 = jnp.dot(xh_taps[...], m1_ref[...],
                   preferred_element_type=jnp.float32) + b1_ref[...]

    rz = jax.nn.sigmoid(acc1[:, :2 * BWC])        # one wide 256-lane sigmoid
    r = rz[:, :BWC]
    z = rz[:, BWC:]
    n_x = acc1[:, 2 * BWC:]                       # conv_in(x) + b_in

    # ---- GEMM 2: conv_hn(h * r), same tap-folding trick.
    h = h_ref[...]
    sr = h * r
    sr_read = lambda s, n: sr[s:s + n, :]
    for dy in range(K):
        shifted_store(sr_taps, dy * BWC, sr_read, dy - p)

    acc2 = jnp.dot(sr_taps[...], m2_ref[...], preferred_element_type=jnp.float32)

    n = jnp.tanh(n_x + acc2 + b2_ref[...])
    out_ref[...] = n + z * (h - n)                # == z*h + (1-z)*n


def pack_conv_gru_params(params, K, W, C, B):
    """One-time packing of the 6 conv weights into dy-folded, batch-block-
    diagonal, banded GEMM matrices (hoist this out of any recurrent loop)."""
    p = (K - 1) // 2
    WC = W * C
    BWC = B * WC

    def banded(w, dy):
        # (Cout, Cin, K, K) -> batch-block-diag (B*W*Cin, B*W*Cout) for kernel
        # row dy; block (x_in, x_out) = w[:, :, dy, x_in - x_out + p].T, zero
        # outside the band (this encodes both the dx offsets and x padding).
        cout, cin = w.shape[0], w.shape[1]
        m = jnp.zeros((W * cin, W * cout), jnp.float32)
        for dx in range(K):
            eye = jnp.eye(W, W, k=p - dx, dtype=jnp.float32)
            m = m + jnp.kron(eye, w[:, :, dy, dx].T.astype(jnp.float32))
        return jnp.kron(jnp.eye(B, dtype=jnp.float32), m)

    zero_blk = jnp.zeros((BWC, BWC), jnp.float32)
    m1_rows, m2_rows = [], []
    for dy in range(K):
        mx = jnp.concatenate([banded(params["w_ir"], dy),
                              banded(params["w_iz"], dy),
                              banded(params["w_in"], dy)], axis=1)   # (BWC, 3BWC)
        mh = jnp.concatenate([banded(params["w_hr"], dy),
                              banded(params["w_hz"], dy),
                              zero_blk], axis=1)                     # (BWC, 3BWC)
        m1_rows.append(jnp.concatenate([mx, mh], axis=0))            # (2BWC, 3BWC)
        m2_rows.append(banded(params["w_hn"], dy))                   # (BWC, BWC)
    m1 = jnp.concatenate(m1_rows, axis=0).astype(jnp.float32)        # (K*2BWC, 3BWC)
    m2 = jnp.concatenate(m2_rows, axis=0).astype(jnp.float32)        # (K*BWC, BWC)

    rep = B * W
    b1 = jnp.concatenate([jnp.tile(params["b_ir"] + params["b_hr"], rep),
                          jnp.tile(params["b_iz"] + params["b_hz"], rep),
                          jnp.tile(params["b_in"], rep)]
                         ).reshape(1, 3 * BWC).astype(jnp.float32)
    b2 = jnp.tile(params["b_hn"], rep).reshape(1, BWC).astype(jnp.float32)
    return m1, m2, b1, b2


def conv_gru_cell_slab(x_slab, h_slab, packed, *, H, BWC, K):
    """One ConvGRU step on lane-packed (H, B*W*C) slabs -> (H, B*W*C) slab.
    Recurrent callers should keep their state in this layout to avoid any
    per-step XLA layout work."""
    m1, m2, b1, b2 = packed
    kernel = functools.partial(_conv_gru_kernel, H=H, BWC=BWC, K=K)
    return pl.pallas_call(
        kernel,
        out_shape=jax.ShapeDtypeStruct((H, BWC), jnp.float32),
        scratch_shapes=[
            pltpu.VMEM((H, K * 2 * BWC), jnp.float32),   # dy-folded [x|h] taps
            pltpu.VMEM((H, K * BWC), jnp.float32),       # dy-folded h*r taps
        ],
    )(x_slab, h_slab, m1, m2, b1, b2)


def conv_gru_cell(x_nchw, h_nchw, packed, K):
    """One ConvGRU step.  x/h are NCHW float32; returns NCHW float32."""
    B, C, H, W = x_nchw.shape
    assert h_nchw.shape == x_nchw.shape
    BWC = B * W * C

    # NCHW -> lane-dense slab (H, B*W*C) with lane = b*W*C + x*C + c.
    # (Pure layout plumbing; vanishes if the caller keeps slab-layout state.)
    def to_slab(a):
        return jnp.transpose(a, (2, 0, 3, 1)).reshape(H, BWC).astype(jnp.float32)

    out_slab = conv_gru_cell_slab(to_slab(x_nchw), to_slab(h_nchw), packed,
                                  H=H, BWC=BWC, K=K)
    return jnp.transpose(out_slab.reshape(H, B, W, C), (1, 3, 0, 2))


def reference_conv_gru(x, h, params, K):
    """Pure-JAX NCHW reference matching PyTorch ConvGRUCellNd.forward."""
    p = (K - 1) // 2

    def conv(inp, w, b):
        out = jax.lax.conv_general_dilated(
            inp, w, window_strides=(1, 1), padding=[(p, p), (p, p)],
            dimension_numbers=("NCHW", "OIHW", "NCHW"))
        return out + b[None, :, None, None]

    r = jax.nn.sigmoid(conv(x, params["w_ir"], params["b_ir"]) +
                       conv(h, params["w_hr"], params["b_hr"]))
    z = jax.nn.sigmoid(conv(x, params["w_iz"], params["b_iz"]) +
                       conv(h, params["w_hz"], params["b_hz"]))
    n = jnp.tanh(conv(x, params["w_in"], params["b_in"]) +
                 conv(h * r, params["w_hn"], params["b_hn"]))
    return z * h + (1 - z) * n


def make_params(key, C, K):
    # Deterministic PyTorch-like init: U(-bound, bound), bound = 1/sqrt(Cin*K*K).
    bound = 1.0 / (C * K * K) ** 0.5
    names = ["ir", "hr", "iz", "hz", "in", "hn"]
    params = {}
    keys = jax.random.split(key, 2 * len(names))
    for i, nm in enumerate(names):
        params[f"w_{nm}"] = jax.random.uniform(
            keys[2 * i], (C, C, K, K), jnp.float32, -bound, bound)
        params[f"b_{nm}"] = jax.random.uniform(
            keys[2 * i + 1], (C,), jnp.float32, -bound, bound)
    return params


if __name__ == "__main__":
    B, C, H, W, K = 2, 4, 16, 16, 3   # in_size == out_size == 4, kernel 3, pad 1

    key = jax.random.PRNGKey(0)
    kx, kh, kp = jax.random.split(key, 3)
    x = jax.random.normal(kx, (B, C, H, W), jnp.float32)
    state = jax.random.normal(kh, (B, C, H, W), jnp.float32)
    params = make_params(kp, C, K)

    packed = pack_conv_gru_params(params, K, W, C, B)   # hoisted, one-time
    out = jax.block_until_ready(conv_gru_cell(x, state, packed, K))

    ref = jax.block_until_ready(reference_conv_gru(x, state, params, K))
    assert out.shape == (B, C, H, W)
    err = float(jnp.max(jnp.abs(out - ref)))
    assert bool(jnp.allclose(out, ref, atol=5e-4, rtol=5e-4)), f"max abs err {err}"
    print("KERNEL_OK")
</pallas_src>

<mosaic_0001>
module attributes {stable_mosaic.version = 11 : i64} {
  func.func @_conv_gru_kernel(%arg0: memref<16x128xf32, #tpu.memory_space<vmem>>, %arg1: memref<16x128xf32, #tpu.memory_space<vmem>>, %arg2: memref<768x384xf32, #tpu.memory_space<vmem>>, %arg3: memref<384x128xf32, #tpu.memory_space<vmem>>, %arg4: memref<1x384xf32, #tpu.memory_space<vmem>>, %arg5: memref<1x128xf32, #tpu.memory_space<vmem>>, %arg6: memref<16x128xf32, #tpu.memory_space<vmem>>, %arg7: memref<16x768xf32, #tpu.memory_space<vmem>>, %arg8: memref<16x384xf32, #tpu.memory_space<vmem>>) attributes {dimension_semantics = [], scalar_prefetch = 0 : i64, scratch_operands = 2 : i64, tpu.core_type = #tpu.core_type<tc>} {
    %cst = arith.constant 0.000000e+00 : f32
    %0 = vector.broadcast %cst : f32 to vector<1x128xf32>
    %c0 = arith.constant 0 : index
    %c0_0 = arith.constant 0 : index
    %1 = vector.load %arg7[%c0, %c0_0] : memref<16x768xf32, #tpu.memory_space<vmem>>, vector<1x128xf32>
    tpu.vector_store %arg7[%c0, %c0_0], %0 {strides = array<i32>} : memref<16x768xf32, #tpu.memory_space<vmem>>, vector<1x128xf32>,
    %c0_1 = arith.constant 0 : index
    %c0_2 = arith.constant 0 : index
    %2 = vector.load %arg0[%c0_1, %c0_2] : memref<16x128xf32, #tpu.memory_space<vmem>>, vector<15x128xf32>
    %c1 = arith.constant 1 : index
    %c0_3 = arith.constant 0 : index
    %3 = vector.load %arg7[%c1, %c0_3] : memref<16x768xf32, #tpu.memory_space<vmem>>, vector<15x128xf32>
    tpu.vector_store %arg7[%c1, %c0_3], %2 {strides = array<i32>} : memref<16x768xf32, #tpu.memory_space<vmem>>, vector<15x128xf32>,
    %cst_4 = arith.constant 0.000000e+00 : f32
    %4 = vector.broadcast %cst_4 : f32 to vector<1x128xf32>
    %c0_5 = arith.constant 0 : index
    %c128 = arith.constant 128 : index
    %5 = vector.load %arg7[%c0_5, %c128] : memref<16x768xf32, #tpu.memory_space<vmem>>, vector<1x128xf32>
    tpu.vector_store %arg7[%c0_5, %c128], %4 {strides = array<i32>} : memref<16x768xf32, #tpu.memory_space<vmem>>, vector<1x128xf32>,
    %c0_6 = arith.constant 0 : index
    %c0_7 = arith.constant 0 : index
    %6 = vector.load %arg1[%c0_6, %c0_7] : memref<16x128xf32, #tpu.memory_space<vmem>>, vector<15x128xf32>
    %c1_8 = arith.constant 1 : index
    %c128_9 = arith.constant 128 : index
    %7 = vector.load %arg7[%c1_8, %c128_9] : memref<16x768xf32, #tpu.memory_space<vmem>>, vector<15x128xf32>
    tpu.vector_store %arg7[%c1_8, %c128_9], %6 {strides = array<i32>} : memref<16x768xf32, #tpu.memory_space<vmem>>, vector<15x128xf32>,
    %c0_10 = arith.constant 0 : index
    %c0_11 = arith.constant 0 : index
    %8 = vector.load %arg0[%c0_10, %c0_11] : memref<16x128xf32, #tpu.memory_space<vmem>>, vector<16x128xf32>
    %c0_12 = arith.constant 0 : index
    %c256 = arith.constant 256 : index
    %9 = vector.load %arg7[%c0_12, %c256] : memref<16x768xf32, #tpu.memory_space<vmem>>, vector<16x128xf32>
    tpu.vector_store %arg7[%c0_12, %c256], %8 {strides = array<i32>} : memref<16x768xf32, #tpu.memory_space<vmem>>, vector<16x128xf32>,
    %c0_13 = arith.constant 0 : index
    %c0_14 = arith.constant 0 : index
    %10 = vector.load %arg1[%c0_13, %c0_14] : memref<16x128xf32, #tpu.memory_space<vmem>>, vector<16x128xf32>
    %c0_15 = arith.constant 0 : index
    %c384 = arith.constant 384 : index
    %11 = vector.load %arg7[%c0_15, %c384] : memref<16x768xf32, #tpu.memory_space<vmem>>, vector<16x128xf32>
    tpu.vector_store %arg7[%c0_15, %c384], %10 {strides = array<i32>} : memref<16x768xf32, #tpu.memory_space<vmem>>, vector<16x128xf32>,
    %cst_16 = arith.constant 0.000000e+00 : f32
    %12 = vector.broadcast %cst_16 : f32 to vector<1x128xf32>
    %c15 = arith.constant 15 : index
    %c512 = arith.constant 512 : index
    %13 = vector.load %arg7[%c15, %c512] : memref<16x768xf32, #tpu.memory_space<vmem>>, vector<1x128xf32>
    tpu.vector_store %arg7[%c15, %c512], %12 {strides = array<i32>} : memref<16x768xf32, #tpu.memory_space<vmem>>, vector<1x128xf32>,
    %c1_17 = arith.constant 1 : index
    %c0_18 = arith.constant 0 : index
    %14 = vector.load %arg0[%c1_17, %c0_18] : memref<16x128xf32, #tpu.memory_space<vmem>>, vector<15x128xf32>
    %c0_19 = arith.constant 0 : index
    %c512_20 = arith.constant 512 : index
    %15 = vector.load %arg7[%c0_19, %c512_20] : memref<16x768xf32, #tpu.memory_space<vmem>>, vector<15x128xf32>
    tpu.vector_store %arg7[%c0_19, %c512_20], %14 {strides = array<i32>} : memref<16x768xf32, #tpu.memory_space<vmem>>, vector<15x128xf32>,
    %cst_21 = arith.constant 0.000000e+00 : f32
    %16 = vector.broadcast %cst_21 : f32 to vector<1x128xf32>
    %c15_22 = arith.constant 15 : index
    %c640 = arith.constant 640 : index
    %17 = vector.load %arg7[%c15_22, %c640] : memref<16x768xf32, #tpu.memory_space<vmem>>, vector<1x128xf32>
    tpu.vector_store %arg7[%c15_22, %c640], %16 {strides = array<i32>} : memref<16x768xf32, #tpu.memory_space<vmem>>, vector<1x128xf32>,
    %c1_23 = arith.constant 1 : index
    %c0_24 = arith.constant 0 : index
    %18 = vector.load %arg1[%c1_23, %c0_24] : memref<16x128xf32, #tpu.memory_space<vmem>>, vector<15x128xf32>
    %c0_25 = arith.constant 0 : index
    %c640_26 = arith.constant 640 : index
    %19 = vector.load %arg7[%c0_25, %c640_26] : memref<16x768xf32, #tpu.memory_space<vmem>>, vector<15x128xf32>
    tpu.vector_store %arg7[%c0_25, %c640_26], %18 {strides = array<i32>} : memref<16x768xf32, #tpu.memory_space<vmem>>, vector<15x128xf32>,
    %c0_27 = arith.constant 0 : index
    %c0_28 = arith.constant 0 : index
    %20 = vector.load %arg7[%c0_27, %c0_28] : memref<16x768xf32, #tpu.memory_space<vmem>>, vector<16x768xf32>
    %c0_29 = arith.constant 0 : index
    %c0_30 = arith.constant 0 : index
    %21 = vector.load %arg2[%c0_29, %c0_30] : memref<768x384xf32, #tpu.memory_space<vmem>>, vector<768x384xf32>
    %cst_31 = arith.constant dense<0.000000e+00> : vector<16x384xf32>
    %22 = tpu.matmul %20, %21, %cst_31 {dimension_numbers = #tpu.dot_dimension_numbers<[1], [0], [0], [1], [0, 0, 1, 1], [], []>} : vector<16x768xf32>, vector<768x384xf32>, vector<16x384xf32> -> vector<16x384xf32>
    %c0_32 = arith.constant 0 : index
    %c0_33 = arith.constant 0 : index
    %23 = vector.load %arg4[%c0_32, %c0_33] : memref<1x384xf32, #tpu.memory_space<vmem>>, vector<1x384xf32>
    %24 = vector.broadcast %23 : vector<1x384xf32> to vector<16x384xf32>
    %25 = arith.addf %22, %24 : vector<16x384xf32>
    %26 = vector.extract_strided_slice %25 {offsets = [0, 0], sizes = [16, 256], strides = [1, 1]} : vector<16x384xf32> to vector<16x256xf32>
    %27 = arith.negf %26 : vector<16x256xf32>
    %28 = math.exp %27 : vector<16x256xf32>
    %cst_34 = arith.constant 1.000000e+00 : f32
    %29 = vector.broadcast %cst_34 : f32 to vector<16x256xf32>
    %30 = arith.addf %29, %28 : vector<16x256xf32>
    %31 = arith.divf %29, %30 : vector<16x256xf32>
    %32 = vector.extract_strided_slice %31 {offsets = [0, 0], sizes = [16, 128], strides = [1, 1]} : vector<16x256xf32> to vector<16x128xf32>
    %33 = vector.extract_strided_slice %31 {offsets = [0, 128], sizes = [16, 128], strides = [1, 1]} : vector<16x256xf32> to vector<16x128xf32>
    %34 = vector.extract_strided_slice %25 {offsets = [0, 256], sizes = [16, 128], strides = [1, 1]} : vector<16x384xf32> to vector<16x128xf32>
    %c0_35 = arith.constant 0 : index
    %c0_36 = arith.constant 0 : index
    %35 = vector.load %arg1[%c0_35, %c0_36] : memref<16x128xf32, #tpu.memory_space<vmem>>, vector<16x128xf32>
    %36 = arith.mulf %35, %32 : vector<16x128xf32>
    %cst_37 = arith.constant 0.000000e+00 : f32
    %37 = vector.broadcast %cst_37 : f32 to vector<1x128xf32>
    %c0_38 = arith.constant 0 : index
    %c0_39 = arith.constant 0 : index
    %38 = vector.load %arg8[%c0_38, %c0_39] : memref<16x384xf32, #tpu.memory_space<vmem>>, vector<1x128xf32>
    tpu.vector_store %arg8[%c0_38, %c0_39], %37 {strides = array<i32>} : memref<16x384xf32, #tpu.memory_space<vmem>>, vector<1x128xf32>,
    %39 = vector.extract_strided_slice %36 {offsets = [0, 0], sizes = [15, 128], strides = [1, 1]} : vector<16x128xf32> to vector<15x128xf32>
    %c1_40 = arith.constant 1 : index
    %c0_41 = arith.constant 0 : index
    %40 = vector.load %arg8[%c1_40, %c0_41] : memref<16x384xf32, #tpu.memory_space<vmem>>, vector<15x128xf32>
    tpu.vector_store %arg8[%c1_40, %c0_41], %39 {strides = array<i32>} : memref<16x384xf32, #tpu.memory_space<vmem>>, vector<15x128xf32>,
    %c0_42 = arith.constant 0 : index
    %c128_43 = arith.constant 128 : index
    %41 = vector.load %arg8[%c0_42, %c128_43] : memref<16x384xf32, #tpu.memory_space<vmem>>, vector<16x128xf32>
    tpu.vector_store %arg8[%c0_42, %c128_43], %36 {strides = array<i32>} : memref<16x384xf32, #tpu.memory_space<vmem>>, vector<16x128xf32>,
    %cst_44 = arith.constant 0.000000e+00 : f32
    %42 = vector.broadcast %cst_44 : f32 to vector<1x128xf32>
    %c15_45 = arith.constant 15 : index
    %c256_46 = arith.constant 256 : index
    %43 = vector.load %arg8[%c15_45, %c256_46] : memref<16x384xf32, #tpu.memory_space<vmem>>, vector<1x128xf32>
    tpu.vector_store %arg8[%c15_45, %c256_46], %42 {strides = array<i32>} : memref<16x384xf32, #tpu.memory_space<vmem>>, vector<1x128xf32>,
    %44 = vector.extract_strided_slice %36 {offsets = [1, 0], sizes = [15, 128], strides = [1, 1]} : vector<16x128xf32> to vector<15x128xf32>
    %c0_47 = arith.constant 0 : index
    %c256_48 = arith.constant 256 : index
    %45 = vector.load %arg8[%c0_47, %c256_48] : memref<16x384xf32, #tpu.memory_space<vmem>>, vector<15x128xf32>
    tpu.vector_store %arg8[%c0_47, %c256_48], %44 {strides = array<i32>} : memref<16x384xf32, #tpu.memory_space<vmem>>, vector<15x128xf32>,
    %c0_49 = arith.constant 0 : index
    %c0_50 = arith.constant 0 : index
    %46 = vector.load %arg8[%c0_49, %c0_50] : memref<16x384xf32, #tpu.memory_space<vmem>>, vector<16x384xf32>
    %c0_51 = arith.constant 0 : index
    %c0_52 = arith.constant 0 : index
    %47 = vector.load %arg3[%c0_51, %c0_52] : memref<384x128xf32, #tpu.memory_space<vmem>>, vector<384x128xf32>
    %cst_53 = arith.constant dense<0.000000e+00> : vector<16x128xf32>
    %48 = tpu.matmul %46, %47, %cst_53 {dimension_numbers = #tpu.dot_dimension_numbers<[1], [0], [0], [1], [0, 0, 1, 1], [], []>} : vector<16x384xf32>, vector<384x128xf32>, vector<16x128xf32> -> vector<16x128xf32>
    %49 = arith.addf %34, %48 : vector<16x128xf32>
    %c0_54 = arith.constant 0 : index
    %c0_55 = arith.constant 0 : index
    %50 = vector.load %arg5[%c0_54, %c0_55] : memref<1x128xf32, #tpu.memory_space<vmem>>, vector<1x128xf32>
    %51 = vector.broadcast %50 : vector<1x128xf32> to vector<16x128xf32>
    %52 = arith.addf %49, %51 : vector<16x128xf32>
    %53 = math.tanh %52 : vector<16x128xf32>
    %54 = arith.subf %35, %53 : vector<16x128xf32>
    %55 = arith.mulf %33, %54 : vector<16x128xf32>
    %56 = arith.addf %53, %55 : vector<16x128xf32>
    %c0_56 = arith.constant 0 : index
    %c0_57 = arith.constant 0 : index
    %57 = vector.load %arg6[%c0_56, %c0_57] : memref<16x128xf32, #tpu.memory_space<vmem>>, vector<16x128xf32>
    tpu.vector_store %arg6[%c0_56, %c0_57], %56 {strides = array<i32>} : memref<16x128xf32, #tpu.memory_space<vmem>>, vector<16x128xf32>,
    return
  }
}

</mosaic_0001>

<bundles_post_ra>
// kernel: tpu_custom_call.1
= control target key start
LH: loop header
LB: loop body
LE: loop exit
PB: predicated region body
PF: predicated region fallthrough
CT: control target
= control target key end

     0   :  { %11 = vsyncpa [#allocation5], 0  ;;  %s2216_s0 = inlined_call_operand.hbm [shape: f32[16,128], index: 0, kind: input, shape index: {}]   ;;  %s2217_s1 = inlined_call_operand.hbm [shape: f32[16,128], index: 1, kind: input, shape index: {}]   ;;  %s2218_s2 = inlined_call_operand.hbm [shape: f32[768,384], index: 2, kind: input, shape index: {}]   ;;  %s2219_s3 = inlined_call_operand.hbm [shape: f32[384,128], index: 3, kind: input, shape index: {}]   ;;  %s2220_s4 = inlined_call_operand.hbm [shape: f32[1,384], index: 4, kind: input, shape index: {}]   ;;  %s2221_s5 = inlined_call_operand.hbm [shape: f32[1,128], index: 5, kind: input, shape index: {}]   ;;  %s2222_s6 = inlined_call_operand.hbm [shape: f32[16,128], index: 6, kind: output, shape index: {}]  }
   0x1   :  { %12 = vsyncpa [#allocation8], 0 }
   0x2   :  { %13 = vsyncpa [#allocation11], 0 }
   0x3   :  { %14 = vsyncpa [#allocation14], 0 }
   0x4   :  { %15 = vsyncpa [#allocation6], 0  ;;  %s1983_s21 = smov [#allocation7]   ;;  %s1984_s23 = smov [#allocation10]  }
   0x5   :  { %s33_s22 = sshll.u32 %s1983_s21, 4  ;;  %s57_s24 = sshll.u32 %s1984_s23, 4  ;;  %s34_s22 = int_to_ptr.vmem [resolvable:$true] %s33_s22  ;;  %s2030_s24 = int_to_ptr.vmem [resolvable:$true] %s57_s24 }
   0x6   :  { %s1819_s27 = scalar_lea.hbm %s2217_s1, 256 }
   0x7   :  { %p1820_p0 = scmp.ne.s32.totalorder %s2217_s1, %s1819_s27  ;;  %p1823_p1 = scmp.lt.u32.totalorder %s1819_s27, %s2217_s1 }
   0x9   :  { %p1825_p2 = pnand %p1823_p1, %p1820_p0 }
   0xb   :  { %1828 = shalt.err (!%p1825_p2)
}
   0xc   :  { %s1829_s8 = scalar_lea.vmem %s34_s22, 256  ;;  %p1834_p4 = scmp.lt.s32.totalorder %s34_s22, %s34_s22 }
   0xd   :  { %p1830_p3 = scmp.ne.s32.totalorder %s34_s22, %s1829_s8  ;;  %p1835_p5 = scmp.lt.s32.totalorder %s1829_s8, %s1829_s8 }
   0xf   :  { %p1836_p6 = por %p1835_p5, %p1834_p4 }
  0x11   :  { %p1837_p7 = pnand %p1836_p6, %p1830_p3 }
  0x13   :  { %1840 = shalt.err (!%p1837_p7)
}
  0x14   :  { %s1985_s9 = smov 128   ;;  %s1986_s10 = smov 8  }
  0x15   :  { %39 = dma.hbm_to_vmem [thread:$0]  %s2217_s1, 256, %s34_s22, [#allocation8], %s1985_s9, %s1985_s9, %s1986_s10  }
  0x16   :  { %s1841_s15 = scalar_lea.hbm %s2219_s3, 6144 }
  0x17   :  { %p1842_p8 = scmp.ne.s32.totalorder %s2219_s3, %s1841_s15  ;;  %p1845_p9 = scmp.lt.u32.totalorder %s1841_s15, %s2219_s3 }
  0x19   :  { %p1847_p10 = pnand %p1845_p9, %p1842_p8 }
  0x1b   :  { %1850 = shalt.err (!%p1847_p10)
}
  0x1c   :  { %s1851_s20 = scalar_lea.vmem %s2030_s24, 6144  ;;  %p1856_p12 = scmp.lt.s32.totalorder %s2030_s24, %s2030_s24 }
  0x1d   :  { %p1852_p11 = scmp.ne.s32.totalorder %s2030_s24, %s1851_s20  ;;  %p1857_p13 = scmp.lt.s32.totalorder %s1851_s20, %s1851_s20 }
  0x1f   :  { %p1858_p0 = por %p1857_p13, %p1856_p12 }
  0x21   :  { %p1859_p1 = pnand %p1858_p0, %p1852_p11 }
  0x23   :  { %1862 = shalt.err (!%p1859_p1)
}
  0x24   :  { %63 = dma.hbm_to_vmem [thread:$0]  %s2219_s3, 6144, %s2030_s24, [#allocation11], %s1985_s9, %s1985_s9, %s1986_s10  }
  0x25   :  { %s1987_s22 = smov [#allocation4]   ;;  %s1988_s25 = smov [#allocation9]  }
  0x26   :  { %s21_s23 = sshll.u32 %s1987_s22, 4  ;;  %s45_s26 = sshll.u32 %s1988_s25, 4  ;;  %s22_s23 = int_to_ptr.vmem [resolvable:$true] %s21_s23  ;;  %s2067_s26 = int_to_ptr.vmem [resolvable:$true] %s45_s26 }
  0x27   :  { %s1863_s29 = scalar_lea.hbm %s2216_s0, 256 }
  0x28   :  { %p1864_p2 = scmp.ne.s32.totalorder %s2216_s0, %s1863_s29  ;;  %p1867_p3 = scmp.lt.u32.totalorder %s1863_s29, %s2216_s0 }
  0x2a   :  { %p1869_p4 = pnand %p1867_p3, %p1864_p2 }
  0x2c   :  { %1872 = shalt.err (!%p1869_p4)
}
  0x2d   :  { %s1873_s3 = scalar_lea.vmem %s22_s23, 256  ;;  %p1878_p6 = scmp.lt.s32.totalorder %s22_s23, %s22_s23 }
  0x2e   :  { %p1874_p5 = scmp.ne.s32.totalorder %s22_s23, %s1873_s3  ;;  %p1879_p7 = scmp.lt.s32.totalorder %s1873_s3, %s1873_s3 }
  0x30   :  { %p1880_p8 = por %p1879_p7, %p1878_p6 }
  0x32   :  { %p1881_p9 = pnand %p1880_p8, %p1874_p5 }
  0x34   :  { %1884 = shalt.err (!%p1881_p9)
}
  0x35   :  { %27 = dma.hbm_to_vmem [thread:$0]  %s2216_s0, 256, %s22_s23, [#allocation5], %s1985_s9, %s1985_s9, %s1986_s10  }
  0x36   :  { %s1885_s15 = scalar_lea.hbm %s2218_s2, 36864 }
  0x37   :  { %p1886_p10 = scmp.ne.s32.totalorder %s2218_s2, %s1885_s15  ;;  %p1889_p11 = scmp.lt.u32.totalorder %s1885_s15, %s2218_s2 }
  0x39   :  { %p1891_p12 = pnand %p1889_p11, %p1886_p10 }
  0x3b   :  { %1894 = shalt.err (!%p1891_p12)
}
  0x3c   :  { %s1895_s20 = scalar_lea.vmem %s2067_s26, 36864  ;;  %p1900_p0 = scmp.lt.s32.totalorder %s2067_s26, %s2067_s26 }
  0x3d   :  { %p1896_p13 = scmp.ne.s32.totalorder %s2067_s26, %s1895_s20  ;;  %p1901_p1 = scmp.lt.s32.totalorder %s1895_s20, %s1895_s20 }
  0x3f   :  { %p1902_p2 = por %p1901_p1, %p1900_p0 }
  0x41   :  { %p1903_p3 = pnand %p1902_p2, %p1896_p13 }
  0x43   :  { %1906 = shalt.err (!%p1903_p3)
}
  0x44   :  { %s1989_s0 = smov 384   ;;  %s1990_s1 = smov 24  }
  0x45   :  { %51 = dma.hbm_to_vmem [thread:$0]  %s2218_s2, 36864, %s2067_s26, [#allocation8], %s1989_s0, %s1989_s0, %s1990_s1  }
  0x46   :  { %s1991_s23 = smov [#allocation12]   ;;  %s1992_s27 = smov [#allocation13]  }
  0x47   :  { %s70_s25 = sshll.u32 %s1991_s23, 4  ;;  %s80_s28 = sshll.u32 %s1992_s27, 4  ;;  %s71_s25 = int_to_ptr.vmem [resolvable:$true] %s70_s25  ;;  %s81_s28 = int_to_ptr.vmem [resolvable:$true] %s80_s28 }
  0x48   :  { %s1907_s7 = scalar_lea.hbm %s2220_s4, 48 }
  0x49   :  { %p1908_p4 = scmp.ne.s32.totalorder %s2220_s4, %s1907_s7  ;;  %p1911_p5 = scmp.lt.u32.totalorder %s1907_s7, %s2220_s4 }
  0x4b   :  { %p1913_p6 = pnand %p1911_p5, %p1908_p4 }
  0x4d   :  { %1916 = shalt.err (!%p1913_p6)
}
  0x4e   :  { %s1917_s2 = scalar_lea.vmem %s71_s25, 48  ;;  %s1921_s26 = scalar_lea.vmem %s71_s25, 64 }
  0x4f   :  { %p1918_p7 = scmp.ne.s32.totalorder %s71_s25, %s1917_s2  ;;  %p1922_p8 = scmp.lt.s32.totalorder %s71_s25, %s71_s25 }
  0x50   :  { %p1923_p9 = scmp.lt.s32.totalorder %s1921_s26, %s1917_s2 }
  0x52   :  { %p1924_p10 = por %p1923_p9, %p1922_p8 }
  0x54   :  { %p1925_p11 = pnand %p1924_p10, %p1918_p7 }
  0x56   :  { %1928 = shalt.err (!%p1925_p11)
}
  0x57   :  { %73 = dma.hbm_to_vmem [thread:$0]  %s2220_s4, 48, %s71_s25, [#allocation11]  }
  0x58   :  { %s1929_s16 = scalar_lea.hbm %s2221_s5, 16 }
  0x59   :  { %p1930_p12 = scmp.ne.s32.totalorder %s2221_s5, %s1929_s16  ;;  %p1933_p13 = scmp.lt.u32.totalorder %s1929_s16, %s2221_s5 }
  0x5b   :  { %p1935_p0 = pnand %p1933_p13, %p1930_p12 }
  0x5d   :  { %1938 = shalt.err (!%p1935_p0)
}
  0x5e   :  { %s1939_s0 = scalar_lea.vmem %s81_s28, 16  ;;  %s1943_s1 = scalar_lea.vmem %s81_s28, 32 }
  0x5f   :  { %p1940_p1 = scmp.ne.s32.totalorder %s81_s28, %s1939_s0  ;;  %p1944_p2 = scmp.lt.s32.totalorder %s81_s28, %s81_s28 }
  0x60   :  { %p1945_p3 = scmp.lt.s32.totalorder %s1943_s1, %s1939_s0 }
  0x62   :  { %p1946_p4 = por %p1945_p3, %p1944_p2 }
  0x64   :  { %p1947_p5 = pnand %p1946_p4, %p1940_p1 }
  0x66   :  { %1950 = shalt.err (!%p1947_p5)
}
  0x67   :  { %83 = dma.hbm_to_vmem [thread:$0]  %s2221_s5, 16, %s81_s28, [#allocation14]  }
  0x68   :  { %1973 = dma.done.wait [#allocation5], 256  }
  0x69   :  { %1974 = vsyncadd [#allocation5], 4294967040 }
  0x6a   :  { %1975 = dma.done.wait [#allocation8], 37120  }
  0x6b   :  { %1976 = vsyncadd [#allocation8], 4294930176 }
  0x6c   :  { %1977 = dma.done.wait [#allocation11], 6192  }
  0x6d   :  { %1978 = vsyncadd [#allocation11], 4294961104 }
  0x6e   :  { %1979 = dma.done.wait [#allocation14], 16  }
  0x6f   :  { %1980 = vsyncadd [#allocation14], 4294967280  ;;  %v1993_v0 = vmov 0.0   ;;  %v158_v1 = vld [vmem:[#allocation9 + $0x8] sm:$0xff]  ;;  %v161_v2 = vld [vmem:[#allocation9 + $0x20] sm:$0xff]  ;;  %vm107_vm0 = vcmask 1040384  }
  0x70   :  { %115 = vst [vmem:[#allocation2 + $0x8] sm:$0x1] %v1993_v0  ;;  %102 = vst [vmem:[#allocation2] sm:$0x1] %v1993_v0  ;;  %v157_v3 = vld [vmem:[#allocation9] sm:$0xff]  ;;  %v1422_v4 = vpack.c.bf16 %v161_v2, %v158_v1  ;;  %v160_v5 = vld [vmem:[#allocation9 + $0x18] sm:$0xff] }
  0x71   :  { %135 = vst [vmem:[#allocation2 + $0x57] sm:$0x1] %v1993_v0  ;;  %140 = vst [vmem:[#allocation2 + $0x5f] sm:$0x1] %v1993_v0  ;;  %v164_v6 = vld [vmem:[#allocation9 + $0x38] sm:$0xff]  ;;  %v167_v7 = vld [vmem:[#allocation9 + $0x50] sm:$0xff]  ;;  %v1424_v8 = vpack.c.bf16 %v160_v5, %v157_v3 }
  0x72   :  { %946 = vst [vmem:[#allocation3] sm:$0x1] %v1993_v0  ;;  %958 = vst [vmem:[#allocation3 + $0x2f] sm:$0x1] %v1993_v0  ;;  %v1426_v9 = vpack.c.bf16 %v167_v7, %v164_v6  ;;  %v163_v10 = vld [vmem:[#allocation9 + $0x30] sm:$0xff]  ;;  %v166_v11 = vld [vmem:[#allocation9 + $0x48] sm:$0xff]  ;;  %1423 = vmatprep.subr.bf16.mxu0 %v1422_v4 }
  0x73   :  { %v170_v12 = vld [vmem:[#allocation9 + $0x68] sm:$0xff]  ;;  %v173_v13 = vld [vmem:[#allocation9 + $0x80] sm:$0xff]  ;;  %1425 = vmatpush1.bf16.msra.mxu0 %v1424_v8  ;;  %v1428_v14 = vpack.c.bf16 %v166_v11, %v163_v10  ;;  %v172_v17 = vld [vmem:[#allocation9 + $0x78] sm:$0xff]  ;;  %vm959_vm1 = vcmask 1046528   ;;  %s1994_s5 = smov [#allocation15]  }
  0x74   :  { %1427 = vmatprep.subr.bf16.mxu0 %v1426_v9  ;;  %v1430_v15 = vpack.c.bf16 %v173_v13, %v170_v12  ;;  %v169_v16 = vld [vmem:[#allocation9 + $0x60] sm:$0xff]  ;;  %v176_v18 = vld [vmem:[#allocation9 + $0x98] sm:$0xff]  ;;  %v179_v19 = vld [vmem:[#allocation9 + $0xb0] sm:$0xff]  ;;  %s1197_s22 = sshll.u32 %s1994_s5, 4  ;;  %s1198_s22 = int_to_ptr.vmem [resolvable:$true] %s1197_s22 }
  0x75   :  { %v1432_v20 = vpack.c.bf16 %v172_v17, %v169_v16  ;;  %v1434_v21 = vpack.c.bf16 %v179_v19, %v176_v18  ;;  %v175_v22 = vld [vmem:[#allocation9 + $0x90] sm:$0xff]  ;;  %v178_v23 = vld [vmem:[#allocation9 + $0xa8] sm:$0xff]  ;;  %v185_v25 = vld [vmem:[#allocation9 + $0xe0] sm:$0xff]  ;;  %s1951_s23 = scalar_lea.vmem %s1198_s22, 256  ;;  %p1956_p7 = scmp.lt.s32.totalorder %s1198_s22, %s1198_s22 }
  0x76   :  { %v182_v24 = vld [vmem:[#allocation9 + $0xc8] sm:$0xff]  ;;  %v1436_v26 = vpack.c.bf16 %v178_v23, %v175_v22  ;;  %v181_v28 = vld [vmem:[#allocation9 + $0xc0] sm:$0xff]  ;;  %v184_v29 = vld [vmem:[#allocation9 + $0xd8] sm:$0xff]  ;;  %p1952_p6 = scmp.ne.s32.totalorder %s1198_s22, %s1951_s23  ;;  %p1957_p8 = scmp.lt.s32.totalorder %s1951_s23, %s1951_s23 }
  0x77   :  { %1429 = vmatpush1.bf16.msra.mxu0 %v1428_v14  ;;  %v1438_v27 = vpack.c.bf16 %v185_v25, %v182_v24  ;;  %v188_v30 = vld [vmem:[#allocation9 + $0xf8] sm:$0xff]  ;;  %v191_v31 = vld [vmem:[#allocation9 + $0x110] sm:$0xff]  ;;  %v1440_v32 = vpack.c.bf16 %v184_v29, %v181_v28  ;;  %v190_v35 = vld [vmem:[#allocation9 + $0x108] sm:$0xff] }
  0x78   :  { %1431 = vmatprep.subr.bf16.mxu0 %v1430_v15  ;;  %v1442_v33 = vpack.c.bf16 %v191_v31, %v188_v30  ;;  %v187_v34 = vld [vmem:[#allocation9 + $0xf0] sm:$0xff]  ;;  %v194_v36 = vld [vmem:[#allocation9 + $0x128] sm:$0xff]  ;;  %v197_v37 = vld [vmem:[#allocation9 + $0x140] sm:$0xff]  ;;  %p1958_p9 = por %p1957_p8, %p1956_p7 }
  0x79   :  { %v1444_v38 = vpack.c.bf16 %v190_v35, %v187_v34  ;;  %v1446_v39 = vpack.c.bf16 %v197_v37, %v194_v36  ;;  %v193_v40 = vld [vmem:[#allocation9 + $0x120] sm:$0xff]  ;;  %v196_v41 = vld [vmem:[#allocation9 + $0x138] sm:$0xff]  ;;  %v2125_v42 = vld [vmem:[#allocation7] sm:$0xff] }
  0x7a   :  { %v200_v43 = vld [vmem:[#allocation9 + $0x158] sm:$0xff]  ;;  %v203_v44 = vld [vmem:[#allocation9 + $0x170] sm:$0xff]  ;;  %v120_v45 = vrot.slane %v2125_v42, 7  ;;  %v2128_v46 = vld [vmem:[#allocation4] sm:$0xff]  ;;  %v1448_v48 = vpack.c.bf16 %v196_v41, %v193_v40  ;;  %p1959_p10 = pnand %p1958_p9, %p1952_p6 }
  0x7b   :  { %1433 = vmatpush1.bf16.msra.mxu0 %v1432_v20  ;;  %v108_v47 = vrot.slane %v2128_v46, 7  ;;  %v1450_v49 = vpack.c.bf16 %v203_v44, %v200_v43  ;;  %v199_v50 = vld [vmem:[#allocation9 + $0x150] sm:$0xff]  ;;  %v202_v51 = vld [vmem:[#allocation9 + $0x168] sm:$0xff]  ;;  %v209_v53 = vld [vmem:[#allocation9 + $0x1a0] sm:$0xff] }
  0x7c   :  { %1435 = vmatprep.subr.bf16.mxu0 %v1434_v21  ;;  %125 = vst [vmem:[#allocation2 + $0x8] sm:$0xfe] %v120_v45  ;;  %v206_v52 = vld [vmem:[#allocation9 + $0x188] sm:$0xff]  ;;  %v1452_v54 = vpack.c.bf16 %v202_v51, %v199_v50  ;;  %v205_v56 = vld [vmem:[#allocation9 + $0x180] sm:$0xff]  ;;  %v208_v57 = vld [vmem:[#allocation9 + $0x198] sm:$0xff] }
  0x7d   :  { %113 = vst [vmem:[#allocation2] sm:$0xfe] %v108_v47  ;;  %v1454_v55 = vpack.c.bf16 %v209_v53, %v206_v52  ;;  %v212_v58 = vld [vmem:[#allocation9 + $0x1b8] sm:$0xff]  ;;  %v215_v59 = vld [vmem:[#allocation9 + $0x1d0] sm:$0xff]  ;;  %v1456_v61 = vpack.c.bf16 %v208_v57, %v205_v56  ;;  %v214_v0 = vld [vmem:[#allocation9 + $0x1c8] sm:$0xff] }
  0x7e   :  { %v1458_v62 = vpack.c.bf16 %v215_v59, %v212_v58  ;;  %v211_v63 = vld [vmem:[#allocation9 + $0x1b0] sm:$0xff]  ;;  %v218_v1 = vld [vmem:[#allocation9 + $0x1e8] sm:$0xff]  ;;  %v221_v2 = vld [vmem:[#allocation9 + $0x200] sm:$0xff] }
  0x7f   :  { %1437 = vmatpush1.bf16.msra.mxu0 %v1436_v26  ;;  %v1460_v3 = vpack.c.bf16 %v214_v0, %v211_v63  ;;  %v1462_v4 = vpack.c.bf16 %v221_v2, %v218_v1  ;;  %v217_v5 = vld [vmem:[#allocation9 + $0x1e0] sm:$0xff]  ;;  %v220_v6 = vld [vmem:[#allocation9 + $0x1f8] sm:$0xff]  ;;  %v227_v8 = vld [vmem:[#allocation9 + $0x230] sm:$0xff] }
  0x80   :  { %1439 = vmatprep.subr.bf16.mxu0 %v1438_v27  ;;  %v224_v7 = vld [vmem:[#allocation9 + $0x218] sm:$0xff]  ;;  %v1464_v9 = vpack.c.bf16 %v220_v6, %v217_v5  ;;  %v223_v11 = vld [vmem:[#allocation9 + $0x210] sm:$0xff]  ;;  %v226_v12 = vld [vmem:[#allocation9 + $0x228] sm:$0xff] }
  0x81   :  { %v1466_v10 = vpack.c.bf16 %v227_v8, %v224_v7  ;;  %v230_v13 = vld [vmem:[#allocation9 + $0x248] sm:$0xff]  ;;  %v233_v14 = vld [vmem:[#allocation9 + $0x260] sm:$0xff]  ;;  %v117_v15 = vld [vmem:[#allocation7 + $0x8] sm:$0x7f]  ;;  %v1468_v18 = vpack.c.bf16 %v226_v12, %v223_v11 }
  0x82   :  { %v121_v16 = vrot.slane %v117_v15, 7  ;;  %v104_v17 = vld [vmem:[#allocation4 + $0x8] sm:$0x7f]  ;;  %v1470_v20 = vpack.c.bf16 %v233_v14, %v230_v13  ;;  %v229_v21 = vld [vmem:[#allocation9 + $0x240] sm:$0xff]  ;;  %v232_v22 = vld [vmem:[#allocation9 + $0x258] sm:$0xff] }
  0x83   :  { %1441 = vmatpush1.bf16.msra.mxu0 %v1440_v32  ;;  %v146_v60 = vld [vmem:[#allocation2 + $0x8] sm:$0xff]  ;;  %v109_v19 = vrot.slane %v104_v17, 7  ;;  %v239_v25 = vld [vmem:[#allocation9 + $0x290] sm:$0xff]  ;;  %v1472_v27 = vpack.c.bf16 %v232_v22, %v229_v21  ;;  %v238_v30 = vld [vmem:[#allocation9 + $0x288] sm:$0xff] }
  0x84   :  { %1443 = vmatprep.subr.bf16.mxu0 %v1442_v33  ;;  %526 = vmatprep.mubr.f32.mxu0 %v146_v60  ;;  %v2132_v23 = vsel %vm107_vm0, %v120_v45, %v121_v16  ;;  %v236_v24 = vld [vmem:[#allocation9 + $0x278] sm:$0xff]  ;;  %v235_v29 = vld [vmem:[#allocation9 + $0x270] sm:$0xff]  ;;  %v242_v31 = vld [vmem:[#allocation9 + $0x2a8] sm:$0xff] }
  0x85   :  { %757 = vmatprep.mubr.f32.mxu1 %v146_v60  ;;  %v2135_v26 = vsel %vm107_vm0, %v108_v47, %v109_v19  ;;  %v1474_v28 = vpack.c.bf16 %v239_v25, %v236_v24  ;;  %v245_v32 = vld [vmem:[#allocation9 + $0x2c0] sm:$0xff]  ;;  %v1476_v33 = vpack.c.bf16 %v238_v30, %v235_v29  ;;  %v244_v36 = vld [vmem:[#allocation9 + $0x2b8] sm:$0xff]  ;;  %v247_v41 = vld [vmem:[#allocation9 + $0x2d0] sm:$0xff] }
  0x86   :  { %v1478_v34 = vpack.c.bf16 %v245_v32, %v242_v31  ;;  %v241_v35 = vld [vmem:[#allocation9 + $0x2a0] sm:$0xff]  ;;  %v248_v37 = vld [vmem:[#allocation9 + $0x2d8] sm:$0xff]  ;;  %v250_v43 = vld [vmem:[#allocation9 + $0x2e8] sm:$0xff] }
  0x87   :  { %1445 = vmatpush1.bf16.msra.mxu0 %v1444_v38  ;;  %v251_v38 = vld [vmem:[#allocation9 + $0x2f0] sm:$0xff]  ;;  %v254_v44 = vld [vmem:[#allocation9 + $0x308] sm:$0xff]  ;;  %v257_v45 = vld [vmem:[#allocation9 + $0x320] sm:$0xff]  ;;  %v1484_v47 = vpack.c.bf16 %v250_v43, %v247_v41 }
  0x88   :  { %1447 = vmatprep.subr.bf16.mxu0 %v1446_v39  ;;  %v1480_v39 = vpack.c.bf16 %v244_v36, %v241_v35  ;;  %v1482_v40 = vpack.c.bf16 %v251_v38, %v248_v37  ;;  %v256_v50 = vld [vmem:[#allocation9 + $0x318] sm:$0xff]  ;;  %v263_v52 = vld [vmem:[#allocation9 + $0x350] sm:$0xff]  ;;  %v262_v58 = vld [vmem:[#allocation9 + $0x348] sm:$0xff] }
  0x89   :  { %v260_v51 = vld [vmem:[#allocation9 + $0x338] sm:$0xff]  ;;  %v2137_v53 = vld [vmem:[#allocation2] sm:$0xff]  ;;  %v2142_v59 = vld [vmem:[#allocation4 + $0x8] sm:$0xff] }
  0x8a   :  { %v1490_v56 = vpack.c.bf16 %v263_v52, %v260_v51  ;;  %v259_v57 = vld [vmem:[#allocation9 + $0x330] sm:$0xff]  ;;  %v266_v60 = vld [vmem:[#allocation9 + $0x368] sm:$0xff]  ;;  %v142_v0 = vld [vmem:[#allocation7 + $0x9] sm:$0x7f] }
  0x8b   :  { %1449 = vmatpush1.bf16.msra.mxu0 %v1448_v48  ;;  %v1486_v48 = vpack.c.bf16 %v257_v45, %v254_v44  ;;  %v2147_v63 = vld [vmem:[#allocation4 + $0x1] sm:$0xff]  ;;  %v137_v1 = vld [vmem:[#allocation4 + $0x9] sm:$0x7f]  ;;  %v1492_v2 = vpack.c.bf16 %v262_v58, %v259_v57  ;;  %144 = vst [vmem:[#allocation2 + $0x58] sm:$0x7f] %v142_v0  ;;  %v268_v5 = vld [vmem:[#allocation9 + $0x378] sm:$0xff] }
  0x8c   :  { %1451 = vmatprep.subr.bf16.mxu0 %v1450_v49  ;;  %v253_v49 = vld [vmem:[#allocation9 + $0x300] sm:$0xff]  ;;  %139 = vst [vmem:[#allocation2 + $0x50] sm:$0x7f] %v137_v1  ;;  %v272_v6 = vld [vmem:[#allocation9 + $0x398] sm:$0xff]  ;;  %v275_v7 = vld [vmem:[#allocation9 + $0x3b0] sm:$0xff] }
  0x8d   :  { %v271_v8 = vld [vmem:[#allocation9 + $0x390] sm:$0xff]  ;;  %v210_v11 = vld [vmem:[#allocation9 + $0x1a8] sm:$0xff]  ;;  %v213_v16 = vld [vmem:[#allocation9 + $0x1c0] sm:$0xff] }
  0x8e   :  { %v159_v12 = vld [vmem:[#allocation9 + $0x10] sm:$0xff]  ;;  %v162_v15 = vld [vmem:[#allocation9 + $0x28] sm:$0xff]  ;;  %v216_v17 = vld [vmem:[#allocation9 + $0x1d8] sm:$0xff] }
  0x8f   :  { %1453 = vmatpush1.bf16.msra.mxu0 %v1452_v54  ;;  %v1488_v54 = vpack.c.bf16 %v256_v50, %v253_v49  ;;  %v1616_v19 = vpack.c.bf16 %v162_v15, %v159_v12  ;;  %v165_v21 = vld [vmem:[#allocation9 + $0x40] sm:$0xff]  ;;  %v168_v22 = vld [vmem:[#allocation9 + $0x58] sm:$0xff]  ;;  %v219_v24 = vld [vmem:[#allocation9 + $0x1f0] sm:$0xff] }
  0x90   :  { %1455 = vmatprep.subr.bf16.mxu0 %v1454_v55  ;;  %v2139_v55 = vld [vmem:[#allocation7 + $0x8] sm:$0xff]  ;;  %v278_v25 = vld [vmem:[#allocation9 + $0x3c8] sm:$0xff]  ;;  %v1620_v29 = vpack.c.bf16 %v168_v22, %v165_v21  ;;  %v277_v31 = vld [vmem:[#allocation9 + $0x3c0] sm:$0xff] }
  0x91   :  { %134 = vst [vmem:[#allocation2 + $0x48] sm:$0xff] %v2139_v55  ;;  %v280_v36 = vld [vmem:[#allocation9 + $0x3d8] sm:$0xff]  ;;  %v225_v37 = vld [vmem:[#allocation9 + $0x220] sm:$0xff]  ;;  %v283_v44 = vld [vmem:[#allocation9 + $0x3f0] sm:$0xff] }
  0x92   :  { %v228_v38 = vld [vmem:[#allocation9 + $0x238] sm:$0xff]  ;;  %v1504_v43 = vpack.c.bf16 %v280_v36, %v277_v31  ;;  %v286_v50 = vld [vmem:[#allocation9 + $0x408] sm:$0xff]  ;;  %v231_v51 = vld [vmem:[#allocation9 + $0x250] sm:$0xff] }
  0x93   :  { %1457 = vmatpush1.bf16.msra.mxu0 %v1456_v61  ;;  %v269_v61 = vld [vmem:[#allocation9 + $0x380] sm:$0xff]  ;;  %v1626_v45 = vpack.c.bf16 %v228_v38, %v225_v37  ;;  %v234_v52 = vld [vmem:[#allocation9 + $0x268] sm:$0xff]  ;;  %v1508_v58 = vpack.c.bf16 %v286_v50, %v283_v44  ;;  %v183_v0 = vld [vmem:[#allocation9 + $0xd0] sm:$0xff] }
  0x94   :  { %1459 = vmatprep.subr.bf16.mxu0 %v1458_v62  ;;  %v2144_v62 = vld [vmem:[#allocation7 + $0x1] sm:$0xff]  ;;  %v186_v1 = vld [vmem:[#allocation9 + $0xe8] sm:$0xff]  ;;  %v189_v12 = vld [vmem:[#allocation9 + $0x100] sm:$0xff] }
  0x95   :  { %v298_v15 = vld [vmem:[#allocation9 + $0x468] sm:$0xff]  ;;  %v301_v22 = vld [vmem:[#allocation9 + $0x480] sm:$0xff]  ;;  %v252_v31 = vld [vmem:[#allocation9 + $0x2f8] sm:$0xff] }
  0x96   :  { %v307_v36 = vld [vmem:[#allocation9 + $0x4b0] sm:$0xff]  ;;  %v201_v38 = vld [vmem:[#allocation9 + $0x160] sm:$0xff]  ;;  %v306_v44 = vld [vmem:[#allocation9 + $0x4a8] sm:$0xff] }
  0x97   :  { %1461 = vmatpush1.bf16.msra.mxu0 %v1460_v3  ;;  %v1494_v3 = vpack.c.bf16 %v269_v61, %v266_v60  ;;  %v289_v60 = vld [vmem:[#allocation9 + $0x420] sm:$0xff]  ;;  %v1630_v61 = vpack.c.bf16 %v234_v52, %v231_v51  ;;  %v255_v52 = vld [vmem:[#allocation9 + $0x310] sm:$0xff] }
  0x98   :  { %1463 = vmatprep.subr.bf16.mxu0 %v1462_v4  ;;  %v265_v4 = vld [vmem:[#allocation9 + $0x360] sm:$0xff] }
  0x99   :  { %v1496_v13 = vpack.c.bf16 %v268_v5, %v265_v4  ;;  %v237_v4 = vld [vmem:[#allocation9 + $0x280] sm:$0xff]  ;;  %v240_v5 = vld [vmem:[#allocation9 + $0x298] sm:$0xff] }
  0x9a   :  { %v313_v50 = vld [vmem:[#allocation9 + $0x4e0] sm:$0xff] }
  0x9b   :  { %1465 = vmatpush1.bf16.msra.mxu0 %v1464_v9  ;;  %v274_v9 = vld [vmem:[#allocation9 + $0x3a8] sm:$0xff] }
  0x9c   :  { %1467 = vmatprep.subr.bf16.mxu0 %v1466_v10  ;;  %v207_v10 = vld [vmem:[#allocation9 + $0x190] sm:$0xff]  ;;  %v1500_v30 = vpack.c.bf16 %v274_v9, %v271_v8  ;;  %v1632_v8 = vpack.c.bf16 %v186_v1, %v183_v0 }
  0x9d   :  { %v1614_v14 = vpack.c.bf16 %v210_v11, %v207_v10  ;;  %v295_v10 = vld [vmem:[#allocation9 + $0x450] sm:$0xff]  ;;  %v1634_v11 = vpack.c.bf16 %v240_v5, %v237_v4  ;;  %v261_v5 = vld [vmem:[#allocation9 + $0x340] sm:$0xff] }
  0x9e   :  { %v1516_v21 = vpack.c.bf16 %v298_v15, %v295_v10  ;;  %v323_v0 = vld [vmem:[#allocation9 + $0x530] sm:$0xff]  ;;  %v318_v10 = vld [vmem:[#allocation9 + $0x508] sm:$0xff]  ;;  %v325_v15 = vld [vmem:[#allocation9 + $0x540] sm:$0xff] }
  0x9f   :  { %1469 = vmatpush1.bf16.msra.mxu0 %v1468_v18  ;;  %v1498_v18 = vpack.c.bf16 %v275_v7, %v272_v6  ;;  %1615 = vmatprep.subr.bf16.mxu1 %v1614_v14  ;;  %v296_v6 = vld [vmem:[#allocation9 + $0x458] sm:$0xff]  ;;  %v299_v7 = vld [vmem:[#allocation9 + $0x470] sm:$0xff] }
  0xa0   :  { %1471 = vmatprep.subr.bf16.mxu0 %v1470_v20  ;;  %v1618_v20 = vpack.c.bf16 %v216_v17, %v213_v16  ;;  %1617 = vmatpush3.bf16.msra.mxu1 %v1616_v19  ;;  %v1514_v14 = vpack.c.bf16 %v299_v7, %v296_v6  ;;  %v243_v16 = vld [vmem:[#allocation9 + $0x2b0] sm:$0xff]  ;;  %v246_v17 = vld [vmem:[#allocation9 + $0x2c8] sm:$0xff]  ;;  %v305_v19 = vld [vmem:[#allocation9 + $0x4a0] sm:$0xff] }
  0xa1   :  { %v264_v6 = vld [vmem:[#allocation9 + $0x358] sm:$0xff] }
  0xa2   :  { %1619 = vmatprep.subr.bf16.mxu1 %v1618_v20 }
  0xa3   :  { %1473 = vmatpush1.bf16.msra.mxu0 %v1472_v27  ;;  %v281_v27 = vld [vmem:[#allocation9 + $0x3e0] sm:$0xff] }
  0xa4   :  { %1475 = vmatprep.subr.bf16.mxu0 %v1474_v28  ;;  %v222_v28 = vld [vmem:[#allocation9 + $0x208] sm:$0xff]  ;;  %v1502_v35 = vpack.c.bf16 %v281_v27, %v278_v25  ;;  %1621 = vmatpush3.bf16.msra.mxu1 %v1620_v29  ;;  %v195_v25 = vld [vmem:[#allocation9 + $0x130] sm:$0xff]  ;;  %v304_v29 = vld [vmem:[#allocation9 + $0x498] sm:$0xff] }
  0xa5   :  { %v1622_v32 = vpack.c.bf16 %v222_v28, %v219_v24  ;;  %v1638_v24 = vpack.c.bf16 %v246_v17, %v243_v16  ;;  %v198_v27 = vld [vmem:[#allocation9 + $0x148] sm:$0xff]  ;;  %v267_v17 = vld [vmem:[#allocation9 + $0x370] sm:$0xff] }
  0xa7   :  { %1477 = vmatpush1.bf16.msra.mxu0 %v1476_v33  ;;  %v171_v33 = vld [vmem:[#allocation9 + $0x70] sm:$0xff]  ;;  %1623 = vmatprep.subr.bf16.mxu1 %v1622_v32  ;;  %v308_v32 = vld [vmem:[#allocation9 + $0x4b8] sm:$0xff] }
  0xa8   :  { %1479 = vmatprep.subr.bf16.mxu0 %v1478_v34  ;;  %v174_v34 = vld [vmem:[#allocation9 + $0x88] sm:$0xff] }
  0xa9   :  { %v1624_v41 = vpack.c.bf16 %v174_v34, %v171_v33  ;;  %v311_v33 = vld [vmem:[#allocation9 + $0x4d0] sm:$0xff]  ;;  %v1640_v34 = vpack.c.bf16 %v198_v27, %v195_v25 }
  0xaa   :  { %v335_v25 = vld [vmem:[#allocation9 + $0x590] sm:$0xff] }
  0xab   :  { %1481 = vmatpush1.bf16.msra.mxu0 %v1480_v39  ;;  %v284_v39 = vld [vmem:[#allocation9 + $0x3f8] sm:$0xff]  ;;  %1625 = vmatpush3.bf16.msra.mxu1 %v1624_v41  ;;  %v310_v41 = vld [vmem:[#allocation9 + $0x4c8] sm:$0xff]  ;;  %v331_v27 = vld [vmem:[#allocation9 + $0x570] sm:$0xff] }
  0xac   :  { %1483 = vmatprep.subr.bf16.mxu0 %v1482_v40  ;;  %v287_v40 = vld [vmem:[#allocation9 + $0x410] sm:$0xff]  ;;  %1627 = vmatprep.subr.bf16.mxu1 %v1626_v45  ;;  %v314_v45 = vld [vmem:[#allocation9 + $0x4e8] sm:$0xff] }
  0xad   :  { %v1506_v49 = vpack.c.bf16 %v287_v40, %v284_v39  ;;  %v204_v39 = vld [vmem:[#allocation9 + $0x178] sm:$0xff]  ;;  %v1522_v40 = vpack.c.bf16 %v311_v33, %v308_v32  ;;  %v334_v32 = vld [vmem:[#allocation9 + $0x588] sm:$0xff]  ;;  %v327_v33 = vld [vmem:[#allocation9 + $0x550] sm:$0xff] }
  0xaf   :  { %1485 = vmatpush1.bf16.msra.mxu0 %v1484_v47  ;;  %v177_v47 = vld [vmem:[#allocation9 + $0xa0] sm:$0xff] }
  0xb0   :  { %1487 = vmatprep.subr.bf16.mxu0 %v1486_v48  ;;  %v180_v48 = vld [vmem:[#allocation9 + $0xb8] sm:$0xff] }
  0xb1   :  { %v1628_v57 = vpack.c.bf16 %v180_v48, %v177_v47  ;;  %v317_v47 = vld [vmem:[#allocation9 + $0x500] sm:$0xff]  ;;  %v1644_v48 = vpack.c.bf16 %v204_v39, %v201_v38  ;;  %v279_v39 = vld [vmem:[#allocation9 + $0x3d0] sm:$0xff] }
  0xb2   :  { %527 = vmatmul.mubr.f32.vlgmr.msra.gmra.mrb[0].mxu0 %v2137_v53  ;;  %v337_v38 = vld [vmem:[#allocation9 + $0x5a0] sm:$0xff] }
  0xb3   :  { %1489 = vmatpush1.bf16.msra.mxu0 %v1488_v54  ;;  %532 = vmatprep.mubr.f32.mxu0 %v2132_v23  ;;  %v290_v54 = vld [vmem:[#allocation9 + $0x428] sm:$0xff] }
  0xb4   :  { %1491 = vmatprep.subr.bf16.mxu0 %v1490_v56  ;;  %v293_v56 = vld [vmem:[#allocation9 + $0x440] sm:$0xff]  ;;  %1629 = vmatpush3.bf16.msra.mxu1 %v1628_v57  ;;  %v316_v57 = vld [vmem:[#allocation9 + $0x4f8] sm:$0xff] }
  0xb5   :  { %1631 = vmatprep.subr.bf16.mxu1 %v1630_v61  ;;  %v320_v61 = vld [vmem:[#allocation9 + $0x518] sm:$0xff] }
  0xb6   :  { %533 = vmatmul.mubr.f32.gmra.mrb[2].mxu0 %v2135_v26  ;;  %v1530_v7 = vpack.c.bf16 %v323_v0, %v320_v61  ;;  %v342_v61 = vld [vmem:[#allocation9 + $0x5c8] sm:$0xff] }
  0xb7   :  { %1493 = vmatpush1.bf16.msra.mxu0 %v1492_v2  ;;  %603 = vmatprep.mubr.f32.mxu0 %v2125_v42  ;;  %v1510_v2 = vpack.c.bf16 %v293_v56, %v290_v54  ;;  %v258_v54 = vld [vmem:[#allocation9 + $0x328] sm:$0xff]  ;;  %v1526_v56 = vpack.c.bf16 %v317_v47, %v314_v45  ;;  %v336_v45 = vld [vmem:[#allocation9 + $0x598] sm:$0xff] }
  0xb8   :  { %1495 = vmatprep.subr.bf16.mxu0 %v1494_v3  ;;  %v292_v3 = vld [vmem:[#allocation9 + $0x438] sm:$0xff]  ;;  %1633 = vmatpush3.bf16.msra.mxu1 %v1632_v8  ;;  %v1648_v1 = vpack.c.bf16 %v258_v54, %v255_v52  ;;  %v322_v8 = vld [vmem:[#allocation9 + $0x528] sm:$0xff]  ;;  %v285_v54 = vld [vmem:[#allocation9 + $0x400] sm:$0xff] }
  0xb9   :  { %v1512_v9 = vpack.c.bf16 %v292_v3, %v289_v60  ;;  %1635 = vmatprep.subr.bf16.mxu1 %v1634_v11  ;;  %v312_v60 = vld [vmem:[#allocation9 + $0x4d8] sm:$0xff]  ;;  %v319_v3 = vld [vmem:[#allocation9 + $0x510] sm:$0xff]  ;;  %v326_v11 = vld [vmem:[#allocation9 + $0x548] sm:$0xff] }
  0xba   :  { %v344_v47 = vld [vmem:[#allocation9 + $0x5d8] sm:$0xff]  ;;  %v350_v0 = vld [vmem:[#allocation9 + $0x608] sm:$0xff] }
  0xbb   :  { %1497 = vmatpush1.bf16.msra.mxu0 %v1496_v13  ;;  %v192_v13 = vld [vmem:[#allocation9 + $0x118] sm:$0xff] }
  0xbc   :  { %1499 = vmatprep.subr.bf16.mxu0 %v1498_v18  ;;  %v302_v18 = vld [vmem:[#allocation9 + $0x488] sm:$0xff]  ;;  %v1636_v20 = vpack.c.bf16 %v192_v13, %v189_v12  ;;  %v329_v12 = vld [vmem:[#allocation9 + $0x560] sm:$0xff]  ;;  %v1652_v13 = vpack.c.bf16 %v264_v6, %v261_v5  ;;  %v291_v5 = vld [vmem:[#allocation9 + $0x430] sm:$0xff] }
  0xbd   :  { %v1518_v28 = vpack.c.bf16 %v305_v19, %v302_v18  ;;  %v270_v18 = vld [vmem:[#allocation9 + $0x388] sm:$0xff]  ;;  %v1534_v19 = vpack.c.bf16 %v329_v12, %v326_v11  ;;  %v359_v11 = vld [vmem:[#allocation9 + $0x650] sm:$0xff]  ;;  %v345_v12 = vld [vmem:[#allocation9 + $0x5e0] sm:$0xff] }
  0xbe   :  { %1637 = vmatpush3.bf16.msra.mxu1 %v1636_v20  ;;  %v328_v20 = vld [vmem:[#allocation9 + $0x558] sm:$0xff]  ;;  %v294_v6 = vld [vmem:[#allocation9 + $0x448] sm:$0xff] }
  0xbf   :  { %1501 = vmatpush1.bf16.msra.mxu0 %v1500_v30  ;;  %v249_v30 = vld [vmem:[#allocation9 + $0x2e0] sm:$0xff]  ;;  %1639 = vmatprep.subr.bf16.mxu1 %v1638_v24  ;;  %v332_v24 = vld [vmem:[#allocation9 + $0x578] sm:$0xff] }
  0xc0   :  { %1503 = vmatprep.subr.bf16.mxu0 %v1502_v35  ;;  %v1520_v35 = vpack.c.bf16 %v304_v29, %v301_v22  ;;  %v1642_v37 = vpack.c.bf16 %v252_v31, %v249_v30  ;;  %v324_v22 = vld [vmem:[#allocation9 + $0x538] sm:$0xff]  ;;  %v273_v29 = vld [vmem:[#allocation9 + $0x3a0] sm:$0xff]  ;;  %v1538_v31 = vpack.c.bf16 %v335_v25, %v332_v24  ;;  %v399_v25 = vld [vmem:[#allocation9 + $0x790] sm:$0xff] }
  0xc1   :  { %v276_v30 = vld [vmem:[#allocation9 + $0x3b8] sm:$0xff]  ;;  %v365_v24 = vld [vmem:[#allocation9 + $0x680] sm:$0xff] }
  0xc2   :  { %1641 = vmatpush3.bf16.msra.mxu1 %v1640_v34  ;;  %v330_v34 = vld [vmem:[#allocation9 + $0x568] sm:$0xff] }
  0xc3   :  { %1505 = vmatpush1.bf16.msra.mxu0 %v1504_v43  ;;  %v303_v43 = vld [vmem:[#allocation9 + $0x490] sm:$0xff]  ;;  %1643 = vmatprep.subr.bf16.mxu1 %v1642_v37  ;;  %v1540_v37 = vpack.c.bf16 %v334_v32, %v331_v27  ;;  %v364_v32 = vld [vmem:[#allocation9 + $0x678] sm:$0xff] }
  0xc4   :  { %1507 = vmatprep.subr.bf16.mxu0 %v1506_v49  ;;  %v1524_v49 = vpack.c.bf16 %v310_v41, %v307_v36  ;;  %v1646_v51 = vpack.c.bf16 %v306_v44, %v303_v43  ;;  %v341_v36 = vld [vmem:[#allocation9 + $0x5c0] sm:$0xff]  ;;  %v340_v43 = vld [vmem:[#allocation9 + $0x5b8] sm:$0xff] }
  0xc5   :  { %v333_v44 = vld [vmem:[#allocation9 + $0x580] sm:$0xff] }
  0xc6   :  { %1645 = vmatpush3.bf16.msra.mxu1 %v1644_v48  ;;  %v347_v48 = vld [vmem:[#allocation9 + $0x5f0] sm:$0xff]  ;;  %v1666_v52 = vpack.c.bf16 %v336_v45, %v333_v44  ;;  %v370_v44 = vld [vmem:[#allocation9 + $0x6a8] sm:$0xff] }
  0xc7   :  { %1509 = vmatpush1.bf16.msra.mxu0 %v1508_v58  ;;  %v309_v58 = vld [vmem:[#allocation9 + $0x4c0] sm:$0xff]  ;;  %1647 = vmatprep.subr.bf16.mxu1 %v1646_v51  ;;  %v343_v51 = vld [vmem:[#allocation9 + $0x5d0] sm:$0xff] }
  0xc8   :  { %1511 = vmatprep.subr.bf16.mxu0 %v1510_v2  ;;  %v1528_v2 = vpack.c.bf16 %v316_v57, %v313_v50  ;;  %v1650_v4 = vpack.c.bf16 %v312_v60, %v309_v58  ;;  %v1544_v50 = vpack.c.bf16 %v340_v43, %v337_v38  ;;  %v1546_v57 = vpack.c.bf16 %v347_v48, %v344_v47  ;;  %v346_v58 = vld [vmem:[#allocation9 + $0x5e8] sm:$0xff]  ;;  %v339_v60 = vld [vmem:[#allocation9 + $0x5b0] sm:$0xff] }
  0xc9   :  { %758 = vmatmul.mubr.f32.vlgmr.msra.gmra.mrb[0].mxu1 %v2137_v53  ;;  %v1656_v53 = vpack.c.bf16 %v270_v18, %v267_v17  ;;  %v300_v17 = vld [vmem:[#allocation9 + $0x478] sm:$0xff]  ;;  %v411_v45 = vld [vmem:[#allocation9 + $0x7f0] sm:$0xff]  ;;  %v414_v47 = vld [vmem:[#allocation9 + $0x808] sm:$0xff] }
  0xca   :  { %1649 = vmatpush3.bf16.msra.mxu1 %v1648_v1  ;;  %762 = vmatprep.mubr.f32.mxu1 %v2132_v23  ;;  %v1536_v23 = vpack.c.bf16 %v328_v20, %v325_v15  ;;  %v353_v1 = vld [vmem:[#allocation9 + $0x620] sm:$0xff]  ;;  %v358_v20 = vld [vmem:[#allocation9 + $0x648] sm:$0xff] }
  0xcb   :  { %1513 = vmatpush1.bf16.msra.mxu0 %v1512_v9  ;;  %v315_v9 = vld [vmem:[#allocation9 + $0x4f0] sm:$0xff]  ;;  %1651 = vmatprep.subr.bf16.mxu1 %v1650_v4  ;;  %v1670_v4 = vpack.c.bf16 %v342_v61, %v339_v60  ;;  %v374_v48 = vld [vmem:[#allocation9 + $0x6c8] sm:$0xff]  ;;  %v376_v60 = vld [vmem:[#allocation9 + $0x6d8] sm:$0xff] }
  0xcc   :  { %1515 = vmatprep.subr.bf16.mxu0 %v1514_v14  ;;  %v1532_v14 = vpack.c.bf16 %v322_v8, %v319_v3  ;;  %v1654_v16 = vpack.c.bf16 %v318_v10, %v315_v9  ;;  %v1548_v3 = vpack.c.bf16 %v346_v58, %v343_v51  ;;  %v349_v8 = vld [vmem:[#allocation9 + $0x600] sm:$0xff]  ;;  %v352_v9 = vld [vmem:[#allocation9 + $0x618] sm:$0xff] }
  0xcd   :  { %763 = vmatmul.mubr.f32.gmra.mrb[2].mxu1 %v2135_v26  ;;  %v1660_v26 = vpack.c.bf16 %v276_v30, %v273_v29  ;;  %v356_v10 = vld [vmem:[#allocation9 + $0x638] sm:$0xff]  ;;  %v1552_v15 = vpack.c.bf16 %v352_v9, %v349_v8  ;;  %v351_v29 = vld [vmem:[#allocation9 + $0x610] sm:$0xff]  ;;  %v354_v30 = vld [vmem:[#allocation9 + $0x628] sm:$0xff] }
  0xce   :  { %1653 = vmatpush3.bf16.msra.mxu1 %v1652_v13  ;;  %832 = vmatprep.mubr.f32.mxu1 %v2125_v42  ;;  %v1662_v42 = vpack.c.bf16 %v330_v34, %v327_v33  ;;  %v348_v13 = vld [vmem:[#allocation9 + $0x5f8] sm:$0xff]  ;;  %v1554_v18 = vpack.c.bf16 %v359_v11, %v356_v10  ;;  %v405_v34 = vld [vmem:[#allocation9 + $0x7c0] sm:$0xff]  ;;  %v382_v8 = vld [vmem:[#allocation9 + $0x708] sm:$0xff] }
  0xcf   :  { %1517 = vmatpush1.bf16.msra.mxu0 %v1516_v21  ;;  %v321_v21 = vld [vmem:[#allocation9 + $0x520] sm:$0xff]  ;;  %1655 = vmatprep.subr.bf16.mxu1 %v1654_v16  ;;  %v423_v9 = vld [vmem:[#allocation9 + $0x850] sm:$0xff]  ;;  %v426_v10 = vld [vmem:[#allocation9 + $0x868] sm:$0xff] }
  0xd0   :  { %1519 = vmatprep.subr.bf16.mxu0 %v1518_v28  ;;  %v1658_v28 = vpack.c.bf16 %v324_v22, %v321_v21  ;;  %v297_v16 = vld [vmem:[#allocation9 + $0x460] sm:$0xff]  ;;  %v362_v21 = vld [vmem:[#allocation9 + $0x668] sm:$0xff]  ;;  %v1674_v22 = vpack.c.bf16 %v348_v13, %v345_v12 }
  0xd1   :  { %v417_v61 = vld [vmem:[#allocation9 + $0x820] sm:$0xff]  ;;  %v386_v11 = vld [vmem:[#allocation9 + $0x728] sm:$0xff] }
  0xd2   :  { %1657 = vmatpush3.bf16.msra.mxu1 %v1656_v53  ;;  %v402_v53 = vld [vmem:[#allocation9 + $0x7a8] sm:$0xff]  ;;  %v389_v12 = vld [vmem:[#allocation9 + $0x740] sm:$0xff] }
  0xd3   :  { %1521 = vmatpush1.bf16.msra.mxu0 %v1520_v35  ;;  %v338_v35 = vld [vmem:[#allocation9 + $0x5a8] sm:$0xff]  ;;  %1659 = vmatprep.subr.bf16.mxu1 %v1658_v28  ;;  %v361_v28 = vld [vmem:[#allocation9 + $0x660] sm:$0xff]  ;;  %v1678_v33 = vpack.c.bf16 %v402_v53, %v399_v25  ;;  %v391_v53 = vld [vmem:[#allocation9 + $0x750] sm:$0xff] }
  0xd4   :  { %1523 = vmatprep.subr.bf16.mxu0 %v1522_v40  ;;  %v282_v40 = vld [vmem:[#allocation9 + $0x3e8] sm:$0xff]  ;;  %v1542_v41 = vpack.c.bf16 %v341_v36, %v338_v35  ;;  %v408_v35 = vld [vmem:[#allocation9 + $0x7d8] sm:$0xff]  ;;  %v1560_v38 = vpack.c.bf16 %v364_v32, %v361_v28 }
  0xd5   :  { %v368_v36 = vld [vmem:[#allocation9 + $0x698] sm:$0xff]  ;;  %v438_v32 = vld [vmem:[#allocation9 + $0x8c8] sm:$0xff] }
  0xd6   :  { %1661 = vmatpush3.bf16.msra.mxu1 %v1660_v26  ;;  %v371_v26 = vld [vmem:[#allocation9 + $0x6b0] sm:$0xff]  ;;  %v384_v28 = vld [vmem:[#allocation9 + $0x718] sm:$0xff] }
  0xd7   :  { %1525 = vmatpush1.bf16.msra.mxu0 %v1524_v49  ;;  %v1664_v49 = vpack.c.bf16 %v282_v40, %v279_v39  ;;  %1663 = vmatprep.subr.bf16.mxu1 %v1662_v42  ;;  %v367_v42 = vld [vmem:[#allocation9 + $0x690] sm:$0xff]  ;;  %v1682_v39 = vpack.c.bf16 %v408_v35, %v405_v34  ;;  %v357_v40 = vld [vmem:[#allocation9 + $0x640] sm:$0xff]  ;;  %v1562_v43 = vpack.c.bf16 %v371_v26, %v368_v36 }
  0xd8   :  { %1527 = vmatprep.subr.bf16.mxu0 %v1526_v56  ;;  %v288_v56 = vld [vmem:[#allocation9 + $0x418] sm:$0xff]  ;;  %v1564_v51 = vpack.c.bf16 %v370_v44, %v367_v42  ;;  %v401_v34 = vld [vmem:[#allocation9 + $0x7a0] sm:$0xff]  ;;  %v390_v42 = vld [vmem:[#allocation9 + $0x748] sm:$0xff] }
  0xd9   :  { %v397_v26 = vld [vmem:[#allocation9 + $0x780] sm:$0xff]  ;;  %v404_v44 = vld [vmem:[#allocation9 + $0x7b8] sm:$0xff] }
  0xda   :  { %1665 = vmatpush3.bf16.msra.mxu1 %v1664_v49  ;;  %v377_v49 = vld [vmem:[#allocation9 + $0x6e0] sm:$0xff] }
  0xdb   :  { %1529 = vmatpush1.bf16.msra.mxu0 %v1528_v2  ;;  %v1668_v2 = vpack.c.bf16 %v288_v56, %v285_v54  ;;  %1667 = vmatprep.subr.bf16.mxu1 %v1666_v52  ;;  %v373_v52 = vld [vmem:[#allocation9 + $0x6c0] sm:$0xff]  ;;  %v1686_v54 = vpack.c.bf16 %v414_v47, %v411_v45  ;;  %v363_v56 = vld [vmem:[#allocation9 + $0x670] sm:$0xff]  ;;  %v1566_v58 = vpack.c.bf16 %v377_v49, %v374_v48 }
  0xdc   :  { %1531 = vmatprep.subr.bf16.mxu0 %v1530_v7  ;;  %v1550_v7 = vpack.c.bf16 %v353_v1, %v350_v0  ;;  %v420_v0 = vld [vmem:[#allocation9 + $0x838] sm:$0xff]  ;;  %v407_v45 = vld [vmem:[#allocation9 + $0x7d0] sm:$0xff] }
  0xdd   :  { %v380_v1 = vld [vmem:[#allocation9 + $0x6f8] sm:$0xff] }
  0xde   :  { %1669 = vmatpush3.bf16.msra.mxu1 %v1668_v2  ;;  %v383_v2 = vld [vmem:[#allocation9 + $0x710] sm:$0xff] }
  0xdf   :  { %1533 = vmatpush1.bf16.msra.mxu0 %v1532_v14  ;;  %v1672_v14 = vpack.c.bf16 %v294_v6, %v291_v5  ;;  %1671 = vmatprep.subr.bf16.mxu1 %v1670_v4  ;;  %v1690_v4 = vpack.c.bf16 %v420_v0, %v417_v61  ;;  %v369_v5 = vld [vmem:[#allocation9 + $0x6a0] sm:$0xff]  ;;  %v372_v6 = vld [vmem:[#allocation9 + $0x6b8] sm:$0xff] }
  0xe0   :  { %1535 = vmatprep.subr.bf16.mxu0 %v1534_v19  ;;  %v355_v19 = vld [vmem:[#allocation9 + $0x630] sm:$0xff] }
  0xe1   :  { %v1556_v27 = vpack.c.bf16 %v358_v20, %v355_v19  ;;  %v429_v19 = vld [vmem:[#allocation9 + $0x880] sm:$0xff]  ;;  %v432_v20 = vld [vmem:[#allocation9 + $0x898] sm:$0xff] }
  0xe2   :  { %1673 = vmatpush3.bf16.msra.mxu1 %v1672_v14  ;;  %v385_v14 = vld [vmem:[#allocation9 + $0x720] sm:$0xff] }
  0xe3   :  { %1537 = vmatpush1.bf16.msra.mxu0 %v1536_v23  ;;  %v1676_v23 = vpack.c.bf16 %v300_v17, %v297_v16  ;;  %1675 = vmatprep.subr.bf16.mxu1 %v1674_v22  ;;  %v378_v16 = vld [vmem:[#allocation9 + $0x6e8] sm:$0xff]  ;;  %v1574_v17 = vpack.c.bf16 %v389_v12, %v386_v11  ;;  %v395_v22 = vld [vmem:[#allocation9 + $0x770] sm:$0xff]  ;;  %v421_v12 = vld [vmem:[#allocation9 + $0x840] sm:$0xff] }
  0xe4   :  { %1539 = vmatprep.subr.bf16.mxu0 %v1538_v31  ;;  %v1558_v31 = vpack.c.bf16 %v365_v24, %v362_v21  ;;  %v392_v21 = vld [vmem:[#allocation9 + $0x758] sm:$0xff] }
  0xe6   :  { %1677 = vmatpush3.bf16.msra.mxu1 %v1676_v23  ;;  %v1698_v23 = vpack.c.bf16 %v432_v20, %v429_v19  ;;  %v434_v19 = vld [vmem:[#allocation9 + $0x8a8] sm:$0xff]  ;;  %v437_v20 = vld [vmem:[#allocation9 + $0x8c0] sm:$0xff] }
  0xe7   :  { %1541 = vmatpush1.bf16.msra.mxu0 %v1540_v37  ;;  %v1680_v37 = vpack.c.bf16 %v354_v30, %v351_v29  ;;  %1679 = vmatprep.subr.bf16.mxu1 %v1678_v33  ;;  %v1578_v29 = vpack.c.bf16 %v395_v22, %v392_v21  ;;  %v394_v30 = vld [vmem:[#allocation9 + $0x768] sm:$0xff]  ;;  %v1606_v22 = vpack.c.bf16 %v437_v20, %v434_v19  ;;  %v447_v19 = vlaneseq }
  0xe8   :  { %1543 = vmatprep.subr.bf16.mxu0 %v1542_v41  ;;  %v360_v41 = vld [vmem:[#allocation9 + $0x658] sm:$0xff]  ;;  %v398_v33 = vld [vmem:[#allocation9 + $0x788] sm:$0xff]  ;;  %v1580_v36 = vpack.c.bf16 %v394_v30, %v391_v53 }
  0xe9   :  { %833 = vmatmul.mubr.f32.vlgmr.msra.gmra.mrb[4].mxu1 %v2128_v46  ;;  %v440_v53 = vld [vmem:[#allocation9 + $0x8d8] sm:$0xff]  ;;  %v442_v30 = vld [vmem:[#allocation9 + $0x8e8] sm:$0xff]  ;;  %v2169_v20 = vshrl.u32 %v447_v19, 7 }
  0xea   :  { %1681 = vmatpush3.bf16.msra.mxu1 %v1680_v37  ;;  %837 = vmatprep.mubr.f32.mxu1 %v2139_v55  ;;  %v1012_v19 = vld [vmem:[#allocation10 + $0x138] sm:$0xff] }
  0xeb   :  { %1545 = vmatpush1.bf16.msra.mxu0 %v1544_v50  ;;  %v1684_v50 = vpack.c.bf16 %v360_v41, %v357_v40  ;;  %1683 = vmatprep.subr.bf16.mxu1 %v1682_v39  ;;  %v1582_v39 = vpack.c.bf16 %v401_v34, %v398_v33  ;;  %v400_v40 = vld [vmem:[#allocation9 + $0x798] sm:$0xff]  ;;  %v441_v41 = vld [vmem:[#allocation9 + $0x8e0] sm:$0xff]  ;;  %v990_v33 = vld [vmem:[#allocation10 + $0x88] sm:$0xff] }
  0xec   :  { %1547 = vmatprep.subr.bf16.mxu0 %v1546_v57  ;;  %v366_v57 = vld [vmem:[#allocation9 + $0x688] sm:$0xff]  ;;  %v1584_v48 = vpack.c.bf16 %v400_v40, %v397_v26  ;;  %v976_v40 = vld [vmem:[#allocation10 + $0x18] sm:$0xff] }
  0xed   :  { %838 = vmatmul.mubr.f32.gmra.mrb[6].mxu1 %v2142_v59 }
  0xee   :  { %1685 = vmatpush3.bf16.msra.mxu1 %v1684_v50  ;;  %907 = vmatprep.mubr.f32.mxu1 %v2144_v62  ;;  %v393_v50 = vld [vmem:[#allocation9 + $0x760] sm:$0xff] }
  0xef   :  { %1549 = vmatpush1.bf16.msra.mxu0 %v1548_v3  ;;  %v379_v3 = vld [vmem:[#allocation9 + $0x6f0] sm:$0xff]  ;;  %1687 = vmatprep.subr.bf16.mxu1 %v1686_v54 }
  0xf0   :  { %1551 = vmatprep.subr.bf16.mxu0 %v1550_v7  ;;  %v1570_v7 = vpack.c.bf16 %v383_v2, %v380_v1  ;;  %v1572_v13 = vpack.c.bf16 %v382_v8, %v379_v3  ;;  %v403_v54 = vld [vmem:[#allocation9 + $0x7b0] sm:$0xff]  ;;  %v409_v1 = vld [vmem:[#allocation9 + $0x7e0] sm:$0xff]  ;;  %v412_v2 = vld [vmem:[#allocation9 + $0x7f8] sm:$0xff] }
  0xf1   :  { %v1592_v3 = vpack.c.bf16 %v412_v2, %v409_v1  ;;  %v425_v8 = vld [vmem:[#allocation9 + $0x860] sm:$0xff]  ;;  %v999_v2 = vld [vmem:[#allocation10 + $0xd0] sm:$0xff] }
  0xf2   :  { %604 = vmatmul.mubr.f32.vlgmr.msra.gmra.mrb[0].mxu0 %v2128_v46  ;;  %v1688_v46 = vpack.c.bf16 %v366_v57, %v363_v56  ;;  %v406_v56 = vld [vmem:[#allocation9 + $0x7c8] sm:$0xff] }
  0xf3   :  { %1553 = vmatpush1.bf16.msra.mxu0 %v1552_v15  ;;  %609 = vmatprep.mubr.f32.mxu0 %v2139_v55  ;;  %v1568_v55 = vpack.c.bf16 %v376_v60, %v373_v52  ;;  %v375_v15 = vld [vmem:[#allocation9 + $0x6d0] sm:$0xff]  ;;  %v1586_v52 = vpack.c.bf16 %v407_v45, %v404_v44  ;;  %v410_v57 = vld [vmem:[#allocation9 + $0x7e8] sm:$0xff]  ;;  %v1588_v61 = vpack.c.bf16 %v406_v56, %v403_v54  ;;  %v977_v45 = vld [vmem:[#allocation10 + $0x20] sm:$0xff] }
  0xf4   :  { %1555 = vmatprep.subr.bf16.mxu0 %v1554_v18  ;;  %1689 = vmatpush3.bf16.msra.mxu1 %v1688_v46  ;;  %v388_v18 = vld [vmem:[#allocation9 + $0x738] sm:$0xff]  ;;  %v1696_v24 = vpack.c.bf16 %v378_v16, %v375_v15 }
  0xf5   :  { %1691 = vmatprep.subr.bf16.mxu1 %v1690_v4  ;;  %v1576_v25 = vpack.c.bf16 %v388_v18, %v385_v14  ;;  %v416_v46 = vld [vmem:[#allocation9 + $0x818] sm:$0xff]  ;;  %v430_v18 = vld [vmem:[#allocation9 + $0x888] sm:$0xff] }
  0xf6   :  { %610 = vmatmul.mubr.f32.gmra.mrb[2].mxu0 %v2142_v59  ;;  %v1692_v59 = vpack.c.bf16 %v372_v6, %v369_v5  ;;  %v415_v5 = vld [vmem:[#allocation9 + $0x810] sm:$0xff]  ;;  %v418_v6 = vld [vmem:[#allocation9 + $0x828] sm:$0xff]  ;;  %v428_v14 = vld [vmem:[#allocation9 + $0x878] sm:$0xff] }
  0xf7   :  { %1557 = vmatpush1.bf16.msra.mxu0 %v1556_v27  ;;  %680 = vmatprep.mubr.f32.mxu0 %v2144_v62  ;;  %v1694_v62 = vpack.c.bf16 %v426_v10, %v423_v9  ;;  %v381_v27 = vld [vmem:[#allocation9 + $0x700] sm:$0xff]  ;;  %v156_v9 = vld [vmem:[#allocation2 + $0x58] sm:$0xff]  ;;  %v1596_v10 = vpack.c.bf16 %v418_v6, %v415_v5  ;;  %v980_v54 = vld [vmem:[#allocation10 + $0x38] sm:$0xff] }
  0xf8   :  { %1559 = vmatprep.subr.bf16.mxu0 %v1558_v31  ;;  %1693 = vmatpush3.bf16.msra.mxu1 %v1692_v59  ;;  %v435_v31 = vld [vmem:[#allocation9 + $0x8b0] sm:$0xff]  ;;  %v1700_v35 = vpack.c.bf16 %v384_v28, %v381_v27  ;;  %v424_v59 = vld [vmem:[#allocation9 + $0x858] sm:$0xff]  ;;  %v1001_v6 = vld [vmem:[#allocation10 + $0xe0] sm:$0xff] }
  0xf9   :  { %1695 = vmatprep.subr.bf16.mxu1 %v1694_v62  ;;  %v1702_v37 = vpack.c.bf16 %v438_v32, %v435_v31  ;;  %v431_v62 = vld [vmem:[#allocation9 + $0x890] sm:$0xff]  ;;  %v1600_v15 = vpack.c.bf16 %v424_v59, %v421_v12  ;;  %v989_v32 = vld [vmem:[#allocation10 + $0x80] sm:$0xff]  ;;  %v1004_v59 = vld [vmem:[#allocation10 + $0xf8] sm:$0xff] }
  0xfa   :  { %v1602_v16 = vpack.c.bf16 %v431_v62, %v428_v14  ;;  %v1710_v34 = vpack.c.bf16 %v990_v33, %v989_v32  ;;  %v1003_v12 = vld [vmem:[#allocation10 + $0xf0] sm:$0xff]  ;;  %v988_v62 = vld [vmem:[#allocation10 + $0x78] sm:$0xff] }
  0xfb   :  { %1561 = vmatpush1.bf16.msra.mxu0 %v1560_v38  ;;  %v387_v38 = vld [vmem:[#allocation9 + $0x730] sm:$0xff] }
  0xfc   :  { %1563 = vmatprep.subr.bf16.mxu0 %v1562_v43  ;;  %1697 = vmatpush3.bf16.msra.mxu1 %v1696_v24  ;;  %v444_v43 = vld [vmem:[#allocation9 + $0x8f8] sm:$0xff]  ;;  %v1704_v47 = vpack.c.bf16 %v390_v42, %v387_v38  ;;  %v433_v24 = vld [vmem:[#allocation9 + $0x8a0] sm:$0xff]  ;;  %v987_v14 = vld [vmem:[#allocation10 + $0x70] sm:$0xff] }
  0xfd   :  { %1699 = vmatprep.subr.bf16.mxu1 %v1698_v23  ;;  %v1706_v49 = vpack.c.bf16 %v444_v43, %v441_v41  ;;  %v443_v23 = vld [vmem:[#allocation9 + $0x8f0] sm:$0xff]  ;;  %v992_v38 = vld [vmem:[#allocation10 + $0x98] sm:$0xff]  ;;  %v993_v43 = vld [vmem:[#allocation10 + $0xa0] sm:$0xff] }
  0xfe   :  { %v1610_v28 = vpack.c.bf16 %v443_v23, %v440_v53 }
  0xff   :  { %1565 = vmatpush1.bf16.msra.mxu0 %v1564_v51  ;;  %v396_v51 = vld [vmem:[#allocation9 + $0x778] sm:$0xff] }
 0x100   :  { %1567 = vmatprep.subr.bf16.mxu0 %v1566_v58  ;;  %1701 = vmatpush3.bf16.msra.mxu1 %v1700_v35  ;;  %v413_v58 = vld [vmem:[#allocation9 + $0x800] sm:$0xff]  ;;  %v1708_v60 = vpack.c.bf16 %v396_v51, %v393_v50  ;;  %v996_v50 = vld [vmem:[#allocation10 + $0xb8] sm:$0xff] }
 0x101   :  { %1703 = vmatprep.subr.bf16.mxu1 %v1702_v37  ;;  %v1590_v0 = vpack.c.bf16 %v413_v58, %v410_v57  ;;  %v973_v35 = vld [vmem:[#allocation10] sm:$0xff]  ;;  %v991_v37 = vld [vmem:[#allocation10 + $0x90] sm:$0xff]  ;;  %v998_v58 = vld [vmem:[#allocation10 + $0xc8] sm:$0xff] }
 0x102   :  { %v1714_v42 = vpack.c.bf16 %v992_v38, %v991_v37  ;;  %v997_v57 = vld [vmem:[#allocation10 + $0xc0] sm:$0xff] }
 0x103   :  { %1569 = vmatpush1.bf16.msra.mxu0 %v1568_v55  ;;  %v419_v55 = vld [vmem:[#allocation9 + $0x830] sm:$0xff] }
 0x104   :  { %1571 = vmatprep.subr.bf16.mxu0 %v1570_v7  ;;  %1705 = vmatpush3.bf16.msra.mxu1 %v1704_v47  ;;  %v1594_v4 = vpack.c.bf16 %v419_v55, %v416_v46  ;;  %v422_v7 = vld [vmem:[#allocation9 + $0x848] sm:$0xff]  ;;  %v1000_v46 = vld [vmem:[#allocation10 + $0xd8] sm:$0xff] }
 0x105   :  { %1707 = vmatprep.subr.bf16.mxu1 %v1706_v49  ;;  %v1598_v11 = vpack.c.bf16 %v425_v8, %v422_v7  ;;  %v978_v47 = vld [vmem:[#allocation10 + $0x28] sm:$0xff]  ;;  %v995_v49 = vld [vmem:[#allocation10 + $0xb0] sm:$0xff]  ;;  %v1730_v55 = vpack.c.bf16 %v1000_v46, %v999_v2 }
 0x106   :  { %v1722_v51 = vpack.c.bf16 %v996_v50, %v995_v49  ;;  %v1002_v7 = vld [vmem:[#allocation10 + $0xe8] sm:$0xff]  ;;  %v2185_v2 = vld [vmem:[#allocation7] sm:$0xff] }
 0x107   :  { %1573 = vmatpush1.bf16.msra.mxu0 %v1572_v13  ;;  %v155_v13 = vld [vmem:[#allocation2 + $0x50] sm:$0xff]  ;;  %v1734_v8 = vpack.c.bf16 %v1002_v7, %v1001_v6 }
 0x108   :  { %1575 = vmatprep.subr.bf16.mxu0 %v1574_v17  ;;  %1709 = vmatpush3.bf16.msra.mxu1 %v1708_v60  ;;  %v427_v17 = vld [vmem:[#allocation9 + $0x870] sm:$0xff]  ;;  %v1726_v60 = vpack.c.bf16 %v998_v58, %v997_v57 }
 0x109   :  { %v1604_v21 = vpack.c.bf16 %v430_v18, %v427_v17  ;;  %1711 = vmatprep.subr.bf16.mxu1 %v1710_v34  ;;  %v1006_v17 = vld [vmem:[#allocation10 + $0x108] sm:$0xff] }
 0x10b   :  { %1577 = vmatpush1.bf16.msra.mxu0 %v1576_v25  ;;  %908 = vmatmul.mubr.f32.vlgmr.msra.gmra.mrb[8].mxu1 %v2147_v63  ;;  %v436_v25 = vld [vmem:[#allocation9 + $0x8b8] sm:$0xff] }
 0x10c   :  { %1579 = vmatprep.subr.bf16.mxu0 %v1578_v29  ;;  %912 = vmatprep.mubr.f32.mxu1 %v156_v9  ;;  %v1608_v27 = vpack.c.bf16 %v436_v25, %v433_v24  ;;  %v439_v29 = vld [vmem:[#allocation9 + $0x8d0] sm:$0xff]  ;;  %v2172_v24 = vld [vmem:[#allocation12] sm:$0x7] }
 0x10d   :  { %v1612_v31 = vpack.c.bf16 %v442_v30, %v439_v29 }
 0x10f   :  { %1581 = vmatpush1.bf16.msra.mxu0 %v1580_v36  ;;  %913 = vmatmul.mubr.f32.gmra.mrb[10].mxu1 %v155_v13  ;;  %v974_v36 = vld [vmem:[#allocation10 + $0x8] sm:$0xff] }
 0x110   :  { %1583 = vmatprep.subr.bf16.mxu0 %v1582_v39  ;;  %v1712_v26 = vpack.c.bf16 %v974_v36, %v973_v35  ;;  %v975_v39 = vld [vmem:[#allocation10 + $0x10] sm:$0xff] }
 0x111   :  { %v1716_v41 = vpack.c.bf16 %v976_v40, %v975_v39 }
 0x112   :  { %1713 = vmatpush3.bf16.msra.mxu1 %v1712_v26 }
 0x113   :  { %1585 = vmatpush1.bf16.msra.mxu0 %v1584_v48  ;;  %1715 = vmatprep.subr.bf16.mxu1 %v1714_v42  ;;  %v1720_v48 = vpack.c.bf16 %v978_v47, %v977_v45  ;;  %v449_v47 = vsub.s32 0, %v2169_v20 }
 0x114   :  { %1587 = vmatprep.subr.bf16.mxu0 %v1586_v52  ;;  %v979_v52 = vld [vmem:[#allocation10 + $0x30] sm:$0xff] }
 0x115   :  { %v1724_v56 = vpack.c.bf16 %v980_v54, %v979_v52 }
 0x116   :  { %1717 = vmatpush3.bf16.msra.mxu1 %v1716_v41 }
 0x117   :  { %1589 = vmatpush1.bf16.msra.mxu0 %v1588_v61  ;;  %v981_v61 = vld [vmem:[#allocation10 + $0x40] sm:$0xff] }
 0x118   :  { %1591 = vmatprep.subr.bf16.mxu0 %v1590_v0  ;;  %v982_v0 = vld [vmem:[#allocation10 + $0x48] sm:$0xff] }
 0x119   :  { %v1728_v1 = vpack.c.bf16 %v982_v0, %v981_v61 }
 0x11b   :  { %1593 = vmatpush1.bf16.msra.mxu0 %v1592_v3  ;;  %v983_v3 = vld [vmem:[#allocation10 + $0x50] sm:$0xff] }
 0x11c   :  { %1595 = vmatprep.subr.bf16.mxu0 %v1594_v4  ;;  %v984_v4 = vld [vmem:[#allocation10 + $0x58] sm:$0xff] }
 0x11d   :  { %v1732_v5 = vpack.c.bf16 %v984_v4, %v983_v3 }
 0x11f   :  { %1597 = vmatpush1.bf16.msra.mxu0 %v1596_v10  ;;  %v986_v10 = vld [vmem:[#allocation10 + $0x68] sm:$0xff] }
 0x120   :  { %1599 = vmatprep.subr.bf16.mxu0 %v1598_v11 }
 0x123   :  { %1601 = vmatpush1.bf16.msra.mxu0 %v1600_v15  ;;  %v1740_v15 = vpack.c.bf16 %v988_v62, %v987_v14  ;;  %v1009_v62 = vld [vmem:[#allocation10 + $0x120] sm:$0xff] }
 0x124   :  { %1603 = vmatprep.subr.bf16.mxu0 %v1602_v16  ;;  %v1005_v16 = vld [vmem:[#allocation10 + $0x100] sm:$0xff] }
 0x125   :  { %v2166_v18 = vpack.c.bf16 %v1006_v17, %v1005_v16  ;;  %v1011_v17 = vld [vmem:[#allocation10 + $0x130] sm:$0xff] }
 0x127   :  { %1605 = vmatpush1.bf16.msra.mxu0 %v1604_v21 }
 0x128   :  { %1607 = vmatprep.subr.bf16.mxu0 %v1606_v22  ;;  %v457_v22 = vsub.s32 2, %v2169_v20 }
 0x12a   :  { %v458_v53 = vrot.slane %v2172_v24, %v457_v22  ;;  %v1013_v22 = vld [vmem:[#allocation10 + $0x140] sm:$0xff] }
 0x12b   :  { %1609 = vmatpush1.bf16.msra.mxu0 %v1608_v27 }
 0x12c   :  { %1611 = vmatprep.subr.bf16.mxu0 %v1610_v28 }
 0x12f   :  { %1613 = vmatpush1.bf16.msra.mxu0 %v1612_v31 }
 0x132   :  { %681 = vmatmul.mubr.f32.vlgmr.msra.gmra.mrb[0].mxu0 %v2147_v63  ;;  %v994_v63 = vld [vmem:[#allocation10 + $0xa8] sm:$0xff] }
 0x133   :  { %686 = vmatprep.mubr.f32.mxu0 %v156_v9  ;;  %v1718_v44 = vpack.c.bf16 %v994_v63, %v993_v43  ;;  %v985_v9 = vld [vmem:[#allocation10 + $0x60] sm:$0xff] }
 0x134   :  { %v1736_v11 = vpack.c.bf16 %v986_v10, %v985_v9  ;;  %v1007_v10 = vld [vmem:[#allocation10 + $0x110] sm:$0xff] }
 0x135   :  { %1719 = vmatprep.subr.bf16.mxu1 %v1718_v44 }
 0x136   :  { %687 = vmatmul.mubr.f32.gmra.mrb[2].mxu0 %v155_v13  ;;  %1721 = vmatpush3.bf16.msra.mxu1 %v1720_v48  ;;  %v1738_v13 = vpack.c.bf16 %v1004_v59, %v1003_v12  ;;  %v450_v48 = vrot.slane %v2172_v24, %v449_v47 }
 0x137   :  { %1723 = vmatprep.subr.bf16.mxu1 %v1722_v51 }
 0x13a   :  { %1725 = vmatpush3.bf16.msra.mxu1 %v1724_v56 }
 0x13b   :  { %1727 = vmatprep.subr.bf16.mxu1 %v1726_v60 }
 0x13e   :  { %1729 = vmatpush3.bf16.msra.mxu1 %v1728_v1 }
 0x13f   :  { %1731 = vmatprep.subr.bf16.mxu1 %v1730_v55 }
 0x142   :  { %1733 = vmatpush3.bf16.msra.mxu1 %v1732_v5  ;;  %v2188_v5 = vld [vmem:[#allocation2 + $0x48] sm:$0xff] }
 0x143   :  { %1735 = vmatprep.subr.bf16.mxu1 %v1734_v8 }
 0x146   :  { %1737 = vmatpush3.bf16.msra.mxu1 %v1736_v11  ;;  %v1008_v11 = vld [vmem:[#allocation10 + $0x118] sm:$0xff] }
 0x147   :  { %1739 = vmatprep.subr.bf16.mxu1 %v1738_v13  ;;  %v1746_v13 = vpack.c.bf16 %v1008_v11, %v1007_v10 }
 0x14a   :  { %1741 = vmatpush3.bf16.msra.mxu1 %v1740_v15  ;;  %v1010_v15 = vld [vmem:[#allocation10 + $0x128] sm:$0xff] }
 0x14b   :  { %1743 = vmatprep.subr.bf16.mxu1 %v2166_v18  ;;  %v1750_v16 = vpack.c.bf16 %v1010_v15, %v1009_v62 }
 0x19c   :  { %v1249_v21 = vpop.f32.mrb[0].mxu1 }
 0x19d   :  { %v1250_v25 = vpop.f32.mrb[1].mxu1 }
 0x19e   :  { %v1251_v23 = vadd.f32 %v1250_v25, %v1249_v21  ;;  %v1754_v21 = vpack.c.bf16 %v1012_v19, %v1011_v17  ;;  %v1014_v25 = vld [vmem:[#allocation10 + $0x148] sm:$0xff] }
 0x1a0   :  { %v1252_v27 = vpop.f32.mrb[2].mxu1  ;;  %v760_v29 = vadd.f32 %v1251_v23, %v458_v53  ;;  %v1015_v23 = vld [vmem:[#allocation10 + $0x150] sm:$0xff] }
 0x1a1   :  { %v1253_v28 = vpop.f32.mrb[3].mxu1 }
 0x1a2   :  { %v1254_v30 = vadd.f32 %v1253_v28, %v1252_v27  ;;  %v1016_v27 = vld [vmem:[#allocation10 + $0x158] sm:$0xff]  ;;  %v1017_v28 = vld [vmem:[#allocation10 + $0x160] sm:$0xff] }
 0x1a4   :  { %v765_v33 = vadd.f32 %v1254_v30, %v458_v53  ;;  %v1758_v53 = vpack.c.bf16 %v1014_v25, %v1013_v22 }
 0x1bc   :  { %v1287_v31 = vpop.f32.mrb[4].mxu1 }
 0x1bd   :  { %v1288_v32 = vpop.f32.mrb[5].mxu1 }
 0x1be   :  { %v1289_v34 = vadd.f32 %v1288_v32, %v1287_v31  ;;  %v1019_v31 = vld [vmem:[#allocation10 + $0x170] sm:$0xff]  ;;  %v1020_v32 = vld [vmem:[#allocation10 + $0x178] sm:$0xff] }
 0x1c0   :  { %v1290_v35 = vpop.f32.mrb[6].mxu1  ;;  %v835_v26 = vadd.f32 %v1289_v34, %v760_v29  ;;  %v1018_v29 = vld [vmem:[#allocation10 + $0x168] sm:$0xff] }
 0x1c1   :  { %v1291_v36 = vpop.f32.mrb[7].mxu1  ;;  %v1766_v30 = vpack.c.bf16 %v1018_v29, %v1017_v28 }
 0x1c2   :  { %v1292_v37 = vadd.f32 %v1291_v36, %v1290_v35 }
 0x1c4   :  { %v840_v38 = vadd.f32 %v1292_v37, %v765_v33  ;;  %v1770_v33 = vpack.c.bf16 %v1020_v32, %v1019_v31 }
 0x1de   :  { %v1325_v42 = vpop.f32.mrb[8].mxu1 }
 0x1df   :  { %v1326_v39 = vpop.f32.mrb[9].mxu1 }
 0x1e0   :  { %v1327_v40 = vadd.f32 %v1326_v39, %v1325_v42  ;;  %v453_v39 = vsub.s32 1, %v2169_v20 }
 0x1e2   :  { %v2175_v41 = vadd.f32 %v1327_v40, %v835_v26  ;;  %v1328_v43 = vpop.f32.mrb[10].mxu1  ;;  %v454_v40 = vrot.slane %v2172_v24, %v453_v39 }
 0x1e3   :  { %v1329_v63 = vpop.f32.mrb[11].mxu1 }
 0x1e4   :  { %v1330_v44 = vadd.f32 %v1329_v63, %v1328_v43 }
 0x1e6   :  { %v2177_v45 = vadd.f32 %v1330_v44, %v840_v38 }
 0x205   :  { %v682_v49 = vpop.f32.mrb[0].mxu0 }
 0x206   :  { %v1774_v50 = vadd.f32 %v682_v49, %v450_v48  ;;  %v2181_v51 = vpop.f32.mrb[1].mxu0 }
 0x207   :  { %v1775_v63 = vadd.f32 %v2181_v51, %v454_v40 }
 0x208   :  { %v1212_v52 = vmul.f32 -1.442695, %v1774_v50 }
 0x209   :  { %v688_v54 = vpop.f32.mrb[2].mxu0  ;;  %v1213_v47 = vmul.f32 -1.442695, %v1775_v63 }
 0x20a   :  { %1798 = vpow2.f32 %v1212_v52  ;;  %v1776_v56 = vadd.f32 %v688_v54, %v450_v48  ;;  %v2183_v57 = vpop.f32.mrb[3].mxu0  ;;  %v1216_v54 = vld [vmem:[#allocation13] ss:$0 sm:$0xff] }
 0x20b   :  { %v1777_v43 = vadd.f32 %v2183_v57, %v454_v40 }
 0x20c   :  { %v1214_v58 = vmul.f32 -1.442695, %v1776_v56 }
 0x20d   :  { %v1215_v44 = vmul.f32 -1.442695, %v1777_v43 }
 0x20e   :  { %1800 = vpow2.f32 %v1214_v58 }
 0x214   :  { %v1799_v60 = vpop.eup %1798 }
 0x215   :  { %v930_v61 = vadd.f32 1.0, %v1799_v60 }
 0x217   :  { %1802 = vrcp.f32 %v930_v61 }
 0x218   :  { %v1801_v0 = vpop.eup %1800 }
 0x219   :  { %v932_v1 = vadd.f32 1.0, %v1801_v0 }
 0x21b   :  { %1804 = vrcp.f32 %v932_v1 }
 0x21c   :  { %1806 = vpow2.f32 %v1215_v44 }
 0x21d   :  { %1808 = vpow2.f32 %v1213_v47 }
 0x221   :  { %v1803_v46 = vpop.eup %1802 }
 0x222   :  { %v944_v55 = vmul.f32 %v1803_v46, %v2185_v2 }
 0x224   :  { %v949_v3 = vrot.slane %v944_v55, 7  ;;  %1085 = vmatprep.mubr.f32.mxu1 %v944_v55  ;;  %v960_v7 = vrot.slane %v944_v55, 1 }
 0x225   :  { %v1805_v4 = vpop.eup %1804 }
 0x226   :  { %954 = vst [vmem:[#allocation3] sm:$0xfe] %v949_v3  ;;  %v945_v6 = vmul.f32 %v2188_v5, %v1805_v4  ;;  %v1807_v52 = vpop.eup %1806 }
 0x227   :  { %v1809_v58 = vpop.eup %1808  ;;  %v933_v24 = vadd.f32 1.0, %v1807_v52 }
 0x228   :  { %v950_v8 = vrot.slane %v945_v6, 7  ;;  %v961_v9 = vrot.slane %v945_v6, 1  ;;  %v931_v57 = vadd.f32 1.0, %v1809_v58 }
 0x22a   :  { %v951_v12 = vsel %vm107_vm0, %v949_v3, %v950_v8  ;;  %v962_v59 = vsel %vm959_vm1, %v960_v7, %v961_v9  ;;  %966 = vst [vmem:[#allocation3 + $0x28] sm:$0x7f] %v961_v9 }
 0x22d   :  { %v967_v14 = vld [vmem:[#allocation3] sm:$0xff] }
 0x22e   :  { %1086 = vmatmul.mubr.f32.vlgmr.msra.gmra.mrb[12].mxu1 %v967_v14 }
 0x22f   :  { %1745 = vmatpush3.bf16.msra.mxu1 %v2166_v18  ;;  %1090 = vmatprep.mubr.f32.mxu1 %v945_v6  ;;  %v1762_v18 = vpack.c.bf16 %v1016_v27, %v1015_v23 }
 0x230   :  { %1747 = vmatprep.subr.bf16.mxu1 %v1746_v13 }
 0x231   :  { %v972_v34 = vld [vmem:[#allocation3 + $0x28] sm:$0xff] }
 0x232   :  { %1091 = vmatmul.mubr.f32.gmra.mrb[14].mxu1 %v951_v12 }
 0x233   :  { %1749 = vmatpush3.bf16.msra.mxu1 %v1746_v13  ;;  %1419 = vmatprep.mubr.f32.mxu1 %v962_v59 }
 0x234   :  { %1751 = vmatprep.subr.bf16.mxu1 %v1750_v16 }
 0x237   :  { %1753 = vmatpush3.bf16.msra.mxu1 %v1750_v16 }
 0x238   :  { %1755 = vmatprep.subr.bf16.mxu1 %v1754_v21 }
 0x23b   :  { %1757 = vmatpush3.bf16.msra.mxu1 %v1754_v21 }
 0x23c   :  { %1759 = vmatprep.subr.bf16.mxu1 %v1758_v53 }
 0x23f   :  { %1761 = vmatpush3.bf16.msra.mxu1 %v1758_v53 }
 0x240   :  { %1763 = vmatprep.subr.bf16.mxu1 %v1762_v18 }
 0x243   :  { %1765 = vmatpush3.bf16.msra.mxu1 %v1762_v18 }
 0x244   :  { %1767 = vmatprep.subr.bf16.mxu1 %v1766_v30 }
 0x247   :  { %1769 = vmatpush3.bf16.msra.mxu1 %v1766_v30 }
 0x248   :  { %1771 = vmatprep.subr.bf16.mxu1 %v1770_v33 }
 0x24b   :  { %1773 = vmatpush3.bf16.msra.mxu1 %v1770_v33 }
 0x24e   :  { %1420 = vmatmul.mubr.f32.vlgmr.msra.gmra.mrb[16].mxu1 %v972_v34 }
 0x301   :  { %v1363_v35 = vpop.f32.mrb[12].mxu1 }
 0x302   :  { %v1364_v36 = vpop.f32.mrb[13].mxu1 }
 0x303   :  { %v1365_v26 = vadd.f32 %v1364_v36, %v1363_v35 }
 0x305   :  { %v1366_v37 = vpop.f32.mrb[14].mxu1 }
 0x306   :  { %v1367_v38 = vpop.f32.mrb[15].mxu1 }
 0x307   :  { %v1368_v42 = vadd.f32 %v1367_v38, %v1366_v37 }
 0x321   :  { %v1421_v48 = vpop.f32.mrb[16].mxu1 }
 0x322   :  { %v1168_v49 = vadd.f32 %v1421_v48, %v1368_v42  ;;  %v1162_v50 = vpop.f32.mrb[17].mxu1 }
 0x323   :  { %v1163_v56 = vadd.f32 %v1365_v26, %v1162_v50 }
 0x324   :  { %v1172_v60 = vadd.f32 %v1168_v49, %v2177_v45 }
 0x325   :  { %v1171_v20 = vadd.f32 %v1163_v56, %v2175_v41 }
 0x326   :  { %v1181_v61 = vadd.f32 %v1216_v54, %v1172_v60 }
 0x327   :  { %v1180_v0 = vadd.f32 %v1216_v54, %v1171_v20 }
 0x328   :  { %1810 = vtanh.f32 %v1181_v61 }
 0x329   :  { %1812 = vtanh.f32 %v1180_v0 }
 0x32a   :  { %1814 = vrcp.f32 %v933_v24 }
 0x32b   :  { %1816 = vrcp.f32 %v931_v57 }
 0x332   :  { %v1811_v51 = vpop.eup %1810 }
 0x333   :  { %v1813_v1 = vpop.eup %1812  ;;  %v1185_v46 = vsub.f32 %v2188_v5, %v1811_v51 }
 0x334   :  { %v1815_v55 = vpop.eup %1814  ;;  %v1184_v3 = vsub.f32 %v2185_v2, %v1813_v1 }
 0x335   :  { %v1817_v4 = vpop.eup %1816  ;;  %v1187_v6 = vmul.f32 %v1815_v55, %v1185_v46 }
 0x336   :  { %v1186_v41 = vmul.f32 %v1817_v4, %v1184_v3 }
 0x337   :  { %v1189_v45 = vadd.f32 %v1811_v51, %v1187_v6 }
 0x338   :  { %v1188_v7 = vadd.f32 %v1813_v1, %v1186_v41 }
 0x339   :  { %1191 = vst [vmem:[#allocation15 + $0x8] sm:$0xff] %v1189_v45 }
 0x33a   :  { %1190 = vst [vmem:[#allocation15] sm:$0xff] %v1188_v7 }
 0x33b   :  { %1962 = shalt.err (!%p1959_p10)
}
 0x33c   :  { %s1963_s28 = scalar_lea.hbm %s2222_s6, 256 }
 0x33d   :  { %p1964_p11 = scmp.ne.s32.totalorder %s2222_s6, %s1963_s28  ;;  %p1967_p12 = scmp.lt.u32.totalorder %s1963_s28, %s2222_s6 }
 0x33f   :  { %p1969_p13 = pnand %p1967_p12, %p1964_p11 }
 0x341   :  { %1972 = shalt.err (!%p1969_p13)
}
 0x342   :  { %1203 = dma.vmem_to_hbm [thread:$0]  %s1198_s22, 256, %s2222_s6, [#allocation6], %s1985_s9, %s1985_s9, %s1986_s10  }
 0x343   :  { %1981 = dma.done.wait [#allocation6], 256  }
 0x344   :  { %1982 = vsyncadd [#allocation6], 4294967040 }
 0x345   :  { %1207 = vsyncpa [#allocation5], 1 }
 0x346   :  { %1208 = vsyncpa [#allocation8], 1 }
 0x347   :  { %1209 = vsyncpa [#allocation11], 1 }
 0x348   :  { %1210 = vsyncpa [#allocation14], 1 }
 0x349   :  { %1211 = vsyncpa [#allocation6], 1 }

</bundles_post_ra>
